<compile_context>
chip_gen: v5e
topology: v5e:2x2
jax: 0.10.0
libtpu: 0.0.40
codegen_flags: <defaults>
</compile_context>

<pallas_src>
import jax
import jax.numpy as jnp
from jax import lax
from jax.experimental import pallas as pl
from jax.experimental.pallas import tpu as pltpu

# --- model constants (from Sonar_CNN.__init__) --------------------------------
NF = 128                   # conv filters
NN = 75                    # hidden units of first Linear
PO = 4                     # MaxPool1d window
TK = 71                    # conv kernel size
NCLASS = 28                # output classes
L_IN = 554                 # input length: 554 - 71 + 1 = 484, 484 / 4 = 121
L_CONV = L_IN - TK + 1     # 484
L_POOL = L_CONV // PO      # 121
FLAT = L_POOL * NF         # 15488 (PyTorch flatten index = c*121 + l)

# --- kernel-side padded sizes --------------------------------------------------
LPP = 128                  # pool positions padded to a full sublane tile
WIN = 76                   # polyphase window: TK + PO - 1 = 74, rounded to 4*19
XPAD = 640                 # padded x length (>= 4*(LPP-1) + WIN, multiple of 4)
NPAD = 128                 # padded hidden / class dim (lane dense outputs)


# --- fused kernel ----------------------------------------------------------------
def _make_kernel(tb):
    ic = max(8, min(LPP, 1024 // tb))     # pool positions per conv chunk
    nchunk = LPP // ic                    # bounds the live f32 conv intermediate

    def kernel(t2_ref, wc_ref, bc_ref, w1_ref, b1_ref, w2_ref, b2_ref,
               o_ref, pooled_ref):
        # t2_ref:     (LPP*tb, WIN)      bf16, rows ordered (pool pos i, batch t)
        # wc_ref:     (WIN, PO*NF)       bf16 banded conv weight
        # bc_ref:     (1, NF)            f32 conv bias
        # w1_ref:     (L_POOL, NF, NPAD) bf16 Linear1 weight, VMEM resident
        # b1/b2_ref:  (1, NPAD)          f32
        # w2_ref:     (NPAD, NPAD)       bf16
        # o_ref:      (tb, NPAD)         f32 logits (padded classes)
        # pooled_ref: (LPP, tb, NF)      bf16 VMEM scratch
        wbig = wc_ref[...]
        bias = bc_ref[...]                                       # (1, NF)

        # --- conv (all 4 pool offsets at once) + maxpool + bias + ReLU ---------
        for c in range(nchunk):
            r0 = c * ic * tb
            conv = jnp.dot(t2_ref[r0:r0 + ic * tb, :], wbig,
                           preferred_element_type=jnp.float32)   # (ic*tb, PO*NF)
            conv = conv.reshape(ic, tb, PO * NF)                 # free leading split
            m = jnp.maximum(
                jnp.maximum(conv[:, :, 0 * NF:1 * NF], conv[:, :, 1 * NF:2 * NF]),
                jnp.maximum(conv[:, :, 2 * NF:3 * NF], conv[:, :, 3 * NF:4 * NF]))
            pooled_ref[c * ic:(c + 1) * ic] = jnp.maximum(m + bias,
                                                          0.0).astype(pooled_ref.dtype)

        # TODO(synk): Dropout(0.5) is identity in eval mode; train-mode dropout
        # would use pltpu.prng_seed / pltpu.prng_random_bits here on pooled.

        # --- Linear1 accumulated over the 121 valid pool positions --------------
        # (pad rows 121..127 of pooled_ref are never read -> no garbage leakage)
        def body(l, h):
            return h + jnp.dot(pooled_ref[l], w1_ref[l],
                               preferred_element_type=jnp.float32)

        h = lax.fori_loop(0, L_POOL, body, jnp.zeros((tb, NPAD), jnp.float32))
        h = jnp.maximum(h + b1_ref[...], 0.0).astype(jnp.bfloat16)

        # --- Linear2 (bf16 operands, f32 accumulation) ---------------------------
        o_ref[...] = jnp.dot(h, w2_ref[...],
                             preferred_element_type=jnp.float32) + b2_ref[...]

    return kernel


# --- param prep: permute / band / pad / cast once at init time --------------------
def prepare_params(params):
    wc, bc, w1, b1, w2, b2 = params
    # Banded conv weight: Wbig[s, j*NF + f] = wc[s-j, f] for 0 <= s-j < TK.
    wbig = jnp.zeros((WIN, PO, NF), jnp.float32)
    for j in range(PO):
        wbig = wbig.at[j:j + TK, j, :].set(wc)
    wbig = wbig.reshape(WIN, PO * NF).astype(jnp.bfloat16)
    bc_k = bc.astype(jnp.float32)                                    # (1, NF)
    # Linear1: torch flat index c*L_POOL + l  ->  kernel blocks [l][c, n], n padded.
    w1_k = jnp.transpose(w1.reshape(NF, L_POOL, NN), (1, 0, 2))      # (121, 128, 75)
    w1_k = jnp.pad(w1_k, ((0, 0), (0, 0), (0, NPAD - NN))).astype(jnp.bfloat16)
    b1_k = jnp.pad(b1, ((0, 0), (0, NPAD - NN))).astype(jnp.float32)
    w2_k = jnp.pad(w2, ((0, NPAD - NN), (0, NPAD - NCLASS))).astype(jnp.bfloat16)
    b2_k = jnp.pad(b2, ((0, 0), (0, NPAD - NCLASS))).astype(jnp.float32)
    return (wbig, bc_k, w1_k, b1_k, w2_k, b2_k)


def _pick_tb(batch):
    # >=2 grid steps whenever the batch allows it (lets "parallel" semantics
    # shard across v7x's two TensorCores); cap at 32 so the chunked f32 conv
    # intermediate + pooled scratch keep peak VMEM well under every
    # generation's limit (incl. v5e 16 MiB scoped default, v7x 64 MiB physical).
    for tb in (32, 16, 8):
        if batch >= 2 * tb:
            return tb
    return 8


# --- forward -----------------------------------------------------------------------
def sonar_cnn_forward(x, kparams):
    wbig, bc_k, w1_k, b1_k, w2_k, b2_k = kparams
    B = x.shape[0]
    tb = _pick_tb(B)
    nblk = -(-B // tb)
    b_pad = nblk * tb

    xs = x[:, 0, :].astype(jnp.bfloat16)                         # (B, 554)
    xs = jnp.pad(xs, ((0, b_pad - B), (0, XPAD - L_IN)))         # zero pad tail
    xq = xs.reshape(b_pad, XPAD // PO, PO)                       # xq[b,p,r] = x[b,4p+r]
    # T2[b, i, 4m+r] = x[b, 4i + (4m+r)] : every tap the 4 conv positions feeding
    # pooled position i need; built from 19 shifted slices (no gather op).
    t2 = jnp.concatenate([xq[:, m:m + LPP, :] for m in range(WIN // PO)], axis=2)
    # Rows ordered (block, pool position i, batch t) so the kernel needs no relayout.
    t2 = t2.reshape(nblk, tb, LPP, WIN).transpose(0, 2, 1, 3).reshape(b_pad * LPP, WIN)
    # TODO(synk): the remaining ~15x HBM inflation of T2 vs raw x could be removed
    # by building T2 in-kernel from xs via sublane "staircase" pltpu.roll shifts;
    # kept wrapper-side here for lowering robustness.

    kernel = _make_kernel(tb)
    out = pl.pallas_call(
        kernel,
        out_shape=jax.ShapeDtypeStruct((b_pad, NPAD), jnp.float32),
        grid=(nblk,),
        in_specs=[
            pl.BlockSpec((LPP * tb, WIN), lambda b: (b, 0)),
            pl.BlockSpec((WIN, PO * NF), lambda b: (0, 0)),        # resident
            pl.BlockSpec((1, NF), lambda b: (0, 0)),               # resident
            pl.BlockSpec((L_POOL, NF, NPAD), lambda b: (0, 0, 0)),  # resident w1
            pl.BlockSpec((1, NPAD), lambda b: (0, 0)),             # resident
            pl.BlockSpec((NPAD, NPAD), lambda b: (0, 0)),          # resident
            pl.BlockSpec((1, NPAD), lambda b: (0, 0)),             # resident
        ],
        out_specs=pl.BlockSpec((tb, NPAD), lambda b: (b, 0)),
        scratch_shapes=[pltpu.VMEM((LPP, tb, NF), jnp.bfloat16)],
        compiler_params=pltpu.CompilerParams(
            dimension_semantics=("parallel",),
            vmem_limit_bytes=32 * 1024 * 1024),
    )(t2, wbig, bc_k, w1_k, b1_k, w2_k, b2_k)

    return out[:B, :NCLASS]


# --- deterministic parameter init (canonical "PyTorch layout": weight.T) ------------
def init_params(key):
    k1, k2, k3, k4, k5, k6 = jax.random.split(key, 6)
    wc = jax.random.normal(k1, (TK, NF), jnp.float32) * 0.05      # Conv1d weight (K, NF)
    bc = jax.random.normal(k2, (1, NF), jnp.float32) * 0.05       # Conv1d bias
    w1 = jax.random.normal(k3, (FLAT, NN), jnp.float32) * 0.01    # Linear1 weight.T
    b1 = jax.random.normal(k4, (1, NN), jnp.float32) * 0.01
    w2 = jax.random.normal(k5, (NN, NCLASS), jnp.float32) * 0.05  # Linear2 weight.T
    b2 = jax.random.normal(k6, (1, NCLASS), jnp.float32) * 0.05
    return (wc, bc, w1, b1, w2, b2)


if __name__ == "__main__":
    key = jax.random.PRNGKey(0)
    kx, kp = jax.random.split(key)
    B = 2
    x = jax.random.normal(kx, (B, 1, L_IN), jnp.float32)          # NCL like PyTorch
    params = init_params(kp)
    kparams = prepare_params(params)                              # one-time band/pad/cast

    logits = jax.jit(sonar_cnn_forward)(x, kparams)
    jax.block_until_ready(logits)
    assert logits.shape == (B, NCLASS)

    # pure-JAX reference (PyTorch layout / flatten order, same bf16 precision policy)
    wc, bc, w1, b1, w2, b2 = params
    xs = x[:, 0, :]
    ridx = jnp.arange(L_CONV)[:, None] + jnp.arange(TK)[None, :]
    pat = xs[:, ridx].astype(jnp.bfloat16)                        # (B, 484, 71)
    conv = jnp.einsum("blk,kf->blf", pat, wc.astype(jnp.bfloat16),
                      preferred_element_type=jnp.float32)         # (B, 484, 128)
    pool = conv.reshape(B, L_POOL, PO, NF).max(axis=2)            # MaxPool1d(4)
    pool = jnp.maximum(pool + bc[None, :, :], 0.0).astype(jnp.bfloat16)
    flat = pool.transpose(0, 2, 1).reshape(B, FLAT)               # torch flatten c*121+l
    h = jnp.maximum(jnp.dot(flat, w1.astype(jnp.bfloat16),
                            preferred_element_type=jnp.float32) + b1, 0.0)
    ref = jnp.dot(h.astype(jnp.bfloat16), w2.astype(jnp.bfloat16),
                  preferred_element_type=jnp.float32) + b2
    err = float(jnp.max(jnp.abs(logits - ref)))
    assert jnp.allclose(logits, ref, atol=1e-2, rtol=1e-2), err

    print("KERNEL_OK")
</pallas_src>

<mosaic_0001>
module attributes {stable_mosaic.version = 11 : i64} {
  func.func @kernel(%arg0: i32, %arg1: memref<1024x76xbf16, #tpu.memory_space<vmem>>, %arg2: memref<76x512xbf16, #tpu.memory_space<vmem>>, %arg3: memref<1x128xf32, #tpu.memory_space<vmem>>, %arg4: memref<121x128x128xbf16, #tpu.memory_space<vmem>>, %arg5: memref<1x128xf32, #tpu.memory_space<vmem>>, %arg6: memref<128x128xbf16, #tpu.memory_space<vmem>>, %arg7: memref<1x128xf32, #tpu.memory_space<vmem>>, %arg8: memref<8x128xf32, #tpu.memory_space<vmem>>, %arg9: memref<128x8x128xbf16, #tpu.memory_space<vmem>>) attributes {dimension_semantics = [#tpu.dimension_semantics<parallel>], iteration_bounds = array<i64: 1>, scalar_prefetch = 0 : i64, scratch_operands = 1 : i64, tpu.core_type = #tpu.core_type<tc>, window_params = [{transform_indices = @transform_0, window_bounds = array<i64: 1024, 76>}, {pipeline_mode = #tpu.pipeline_mode<synchronous>, transform_indices = @transform_1, window_bounds = array<i64: 76, 512>}, {pipeline_mode = #tpu.pipeline_mode<synchronous>, transform_indices = @transform_2, window_bounds = array<i64: 1, 128>}, {pipeline_mode = #tpu.pipeline_mode<synchronous>, transform_indices = @transform_3, window_bounds = array<i64: 121, 128, 128>}, {pipeline_mode = #tpu.pipeline_mode<synchronous>, transform_indices = @transform_4, window_bounds = array<i64: 1, 128>}, {pipeline_mode = #tpu.pipeline_mode<synchronous>, transform_indices = @transform_5, window_bounds = array<i64: 128, 128>}, {pipeline_mode = #tpu.pipeline_mode<synchronous>, transform_indices = @transform_6, window_bounds = array<i64: 1, 128>}, {transform_indices = @transform_7, window_bounds = array<i64: 8, 128>}]} {
    %c0 = arith.constant 0 : index
    %c0_0 = arith.constant 0 : index
    %0 = vector.load %arg2[%c0, %c0_0] : memref<76x512xbf16, #tpu.memory_space<vmem>>, vector<76x512xbf16>
    %c0_1 = arith.constant 0 : index
    %c0_2 = arith.constant 0 : index
    %1 = vector.load %arg3[%c0_1, %c0_2] : memref<1x128xf32, #tpu.memory_space<vmem>>, vector<1x128xf32>
    %c0_3 = arith.constant 0 : index
    %c0_4 = arith.constant 0 : index
    %2 = vector.load %arg1[%c0_3, %c0_4] : memref<1024x76xbf16, #tpu.memory_space<vmem>>, vector<1024x76xbf16>
    %cst = arith.constant dense<0.000000e+00> : vector<1024x512xf32>
    %3 = tpu.matmul %2, %0, %cst {dimension_numbers = #tpu.dot_dimension_numbers<[1], [0], [0], [1], [0, 0, 1, 1], [], []>} : vector<1024x76xbf16>, vector<76x512xbf16>, vector<1024x512xf32> -> vector<1024x512xf32>
    %4 = vector.shape_cast %3 : vector<1024x512xf32> to vector<128x8x512xf32>
    %5 = vector.extract_strided_slice %4 {offsets = [0, 0, 0], sizes = [128, 8, 128], strides = [1, 1, 1]} : vector<128x8x512xf32> to vector<128x8x128xf32>
    %6 = vector.extract_strided_slice %4 {offsets = [0, 0, 128], sizes = [128, 8, 128], strides = [1, 1, 1]} : vector<128x8x512xf32> to vector<128x8x128xf32>
    %7 = arith.maximumf %5, %6 : vector<128x8x128xf32>
    %8 = vector.extract_strided_slice %4 {offsets = [0, 0, 256], sizes = [128, 8, 128], strides = [1, 1, 1]} : vector<128x8x512xf32> to vector<128x8x128xf32>
    %9 = vector.extract_strided_slice %4 {offsets = [0, 0, 384], sizes = [128, 8, 128], strides = [1, 1, 1]} : vector<128x8x512xf32> to vector<128x8x128xf32>
    %10 = arith.maximumf %8, %9 : vector<128x8x128xf32>
    %11 = arith.maximumf %7, %10 : vector<128x8x128xf32>
    %12 = vector.shape_cast %1 : vector<1x128xf32> to vector<1x1x128xf32>
    %13 = vector.broadcast %12 : vector<1x1x128xf32> to vector<128x8x128xf32>
    %14 = arith.addf %11, %13 : vector<128x8x128xf32>
    %cst_5 = arith.constant 0.000000e+00 : f32
    %15 = vector.broadcast %cst_5 : f32 to vector<128x8x128xf32>
    %16 = arith.maximumf %14, %15 : vector<128x8x128xf32>
    %17 = arith.truncf %16 : vector<128x8x128xf32> to vector<128x8x128xbf16>
    %c0_6 = arith.constant 0 : index
    %c0_7 = arith.constant 0 : index
    %c0_8 = arith.constant 0 : index
    %18 = vector.load %arg9[%c0_6, %c0_7, %c0_8] : memref<128x8x128xbf16, #tpu.memory_space<vmem>>, vector<128x8x128xbf16>
    tpu.vector_store %arg9[%c0_6, %c0_7, %c0_8], %17 {strides = array<i32>} : memref<128x8x128xbf16, #tpu.memory_space<vmem>>, vector<128x8x128xbf16>,
    %cst_9 = arith.constant 0.000000e+00 : f32
    %19 = vector.broadcast %cst_9 : f32 to vector<8x128xf32>
    %c0_i32 = arith.constant 0 : i32
    %c121_i32 = arith.constant 121 : i32
    %20 = arith.addi %c0_i32, %c121_i32 : i32
    %c1_i32 = arith.constant 1 : i32
    %21 = scf.for %arg10 = %c0_i32 to %20 step %c1_i32 iter_args(%arg11 = %19) -> (vector<8x128xf32>)  : i32 {
      %34 = arith.index_cast %arg10 : i32 to index
      %c0_21 = arith.constant 0 : index
      %c0_22 = arith.constant 0 : index
      %35 = vector.load %arg9[%34, %c0_21, %c0_22] : memref<128x8x128xbf16, #tpu.memory_space<vmem>>, vector<1x8x128xbf16>
      %36 = vector.shape_cast %35 : vector<1x8x128xbf16> to vector<8x128xbf16>
      %37 = arith.index_cast %arg10 : i32 to index
      %c0_23 = arith.constant 0 : index
      %c0_24 = arith.constant 0 : index
      %38 = vector.load %arg4[%37, %c0_23, %c0_24] : memref<121x128x128xbf16, #tpu.memory_space<vmem>>, vector<1x128x128xbf16>
      %39 = vector.shape_cast %38 : vector<1x128x128xbf16> to vector<128x128xbf16>
      %cst_25 = arith.constant dense<0.000000e+00> : vector<8x128xf32>
      %40 = tpu.matmul %36, %39, %cst_25 {dimension_numbers = #tpu.dot_dimension_numbers<[1], [0], [0], [1], [0, 0, 1, 1], [], []>} : vector<8x128xbf16>, vector<128x128xbf16>, vector<8x128xf32> -> vector<8x128xf32>
      %41 = arith.addf %arg11, %40 : vector<8x128xf32>
      scf.yield %41 : vector<8x128xf32>
    }
    %c121_i32_10 = arith.constant 121 : i32
    %c0_11 = arith.constant 0 : index
    %c0_12 = arith.constant 0 : index
    %22 = vector.load %arg5[%c0_11, %c0_12] : memref<1x128xf32, #tpu.memory_space<vmem>>, vector<1x128xf32>
    %23 = vector.broadcast %22 : vector<1x128xf32> to vector<8x128xf32>
    %24 = arith.addf %21, %23 : vector<8x128xf32>
    %cst_13 = arith.constant 0.000000e+00 : f32
    %25 = vector.broadcast %cst_13 : f32 to vector<8x128xf32>
    %26 = arith.maximumf %24, %25 : vector<8x128xf32>
    %27 = arith.truncf %26 : vector<8x128xf32> to vector<8x128xbf16>
    %c0_14 = arith.constant 0 : index
    %c0_15 = arith.constant 0 : index
    %28 = vector.load %arg6[%c0_14, %c0_15] : memref<128x128xbf16, #tpu.memory_space<vmem>>, vector<128x128xbf16>
    %cst_16 = arith.constant dense<0.000000e+00> : vector<8x128xf32>
    %29 = tpu.matmul %27, %28, %cst_16 {dimension_numbers = #tpu.dot_dimension_numbers<[1], [0], [0], [1], [0, 0, 1, 1], [], []>} : vector<8x128xbf16>, vector<128x128xbf16>, vector<8x128xf32> -> vector<8x128xf32>
    %c0_17 = arith.constant 0 : index
    %c0_18 = arith.constant 0 : index
    %30 = vector.load %arg7[%c0_17, %c0_18] : memref<1x128xf32, #tpu.memory_space<vmem>>, vector<1x128xf32>
    %31 = vector.broadcast %30 : vector<1x128xf32> to vector<8x128xf32>
    %32 = arith.addf %29, %31 : vector<8x128xf32>
    %c0_19 = arith.constant 0 : index
    %c0_20 = arith.constant 0 : index
    %33 = vector.load %arg8[%c0_19, %c0_20] : memref<8x128xf32, #tpu.memory_space<vmem>>, vector<8x128xf32>
    tpu.vector_store %arg8[%c0_19, %c0_20], %32 {strides = array<i32>} : memref<8x128xf32, #tpu.memory_space<vmem>>, vector<8x128xf32>,
    return
  }
  func.func @transform_0(%arg0: i32) -> (i32, i32) {
    %c0_i32 = arith.constant 0 : i32
    %c0_i32_0 = arith.constant 0 : i32
    return %arg0, %c0_i32 : i32, i32
  }
  func.func @transform_1(%arg0: i32) -> (i32, i32) {
    %c0_i32 = arith.constant 0 : i32
    %c0_i32_0 = arith.constant 0 : i32
    %c0_i32_1 = arith.constant 0 : i32
    return %c0_i32, %c0_i32_0 : i32, i32
  }
  func.func @transform_2(%arg0: i32) -> (i32, i32) {
    %c0_i32 = arith.constant 0 : i32
    %c0_i32_0 = arith.constant 0 : i32
    %c0_i32_1 = arith.constant 0 : i32
    return %c0_i32, %c0_i32_0 : i32, i32
  }
  func.func @transform_3(%arg0: i32) -> (i32, i32, i32) {
    %c0_i32 = arith.constant 0 : i32
    %c0_i32_0 = arith.constant 0 : i32
    %c0_i32_1 = arith.constant 0 : i32
    %c0_i32_2 = arith.constant 0 : i32
    return %c0_i32, %c0_i32_0, %c0_i32_1 : i32, i32, i32
  }
  func.func @transform_4(%arg0: i32) -> (i32, i32) {
    %c0_i32 = arith.constant 0 : i32
    %c0_i32_0 = arith.constant 0 : i32
    %c0_i32_1 = arith.constant 0 : i32
    return %c0_i32, %c0_i32_0 : i32, i32
  }
  func.func @transform_5(%arg0: i32) -> (i32, i32) {
    %c0_i32 = arith.constant 0 : i32
    %c0_i32_0 = arith.constant 0 : i32
    %c0_i32_1 = arith.constant 0 : i32
    return %c0_i32, %c0_i32_0 : i32, i32
  }
  func.func @transform_6(%arg0: i32) -> (i32, i32) {
    %c0_i32 = arith.constant 0 : i32
    %c0_i32_0 = arith.constant 0 : i32
    %c0_i32_1 = arith.constant 0 : i32
    return %c0_i32, %c0_i32_0 : i32, i32
  }
  func.func @transform_7(%arg0: i32) -> (i32, i32) {
    %c0_i32 = arith.constant 0 : i32
    %c0_i32_0 = arith.constant 0 : i32
    return %arg0, %c0_i32 : i32, i32
  }
}

</mosaic_0001>

<bundles_post_ra>
// kernel: sonar_cnn_forward.1
= control target key start
LH: loop header
LB: loop body
LE: loop exit
PB: predicated region body
PF: predicated region fallthrough
CT: control target
= control target key end

     0   :  { %vm785_vm0 = vcmask 1045504   ;;  %vm592_vm1 = vcmask 621568   ;;  %s5190_s1 = inlined_call_operand.vmem [shape: bf16[76,512], index: 1, kind: input, shape index: {}]   ;;  %s5191_s3 = inlined_call_operand.vmem [shape: bf16[121,128,128], index: 3, kind: input, shape index: {}]   ;;  %s5192_s4 = inlined_call_operand.vmem [shape: f32[1,128], index: 4, kind: input, shape index: {}]   ;;  %s5193_s5 = inlined_call_operand.vmem [shape: bf16[128,128], index: 5, kind: input, shape index: {}]   ;;  %s5194_s6 = inlined_call_operand.vmem [shape: f32[1,128], index: 6, kind: input, shape index: {}]   ;;  %s5195_s7 = inlined_call_operand.vmem [shape: f32[8,128], index: 7, kind: output, shape index: {}]   ;;  %s5196_s0 = inlined_call_operand.vmem [shape: bf16[1024,76], index: 0, kind: input, shape index: {}]   ;;  %s5197_s2 = inlined_call_operand.vmem [shape: f32[1,128], index: 2, kind: input, shape index: {}]  }
   0x1   :  { %v3531_v0 = vld [vmem:[%s5190_s1 + $0x80] sm:$0xf]  ;;  %v3886_v1 = vld [vmem:[%s5190_s1 + $0x8c] sm:$0x30]  ;;  %v3884_v2 = vld [vmem:[%s5190_s1 + $0x84] sm:$0xf] }
   0x2   :  { %v3532_v3 = vor.u32 %v3886_v1, %v3531_v0  ;;  %v3533_v4 = vld [vmem:[%s5190_s1 + $0x90] sm:$0x30]  ;;  %v3539_v5 = vld [vmem:[%s5190_s1 + $0x88] sm:$0xf]  ;;  %v3887_v6 = vld [vmem:[%s5190_s1 + $0x94] sm:$0x30] }
   0x3   :  { %v3536_v7 = vor.u32 %v3884_v2, %v3533_v4  ;;  %v3540_v8 = vor.u32 %v3887_v6, %v3539_v5  ;;  %v3885_v9 = vld [vmem:[%s5190_s1 + $0x8c] sm:$0xf]  ;;  %v3541_v10 = vld [vmem:[%s5190_s1 + $0x98] sm:$0x30]  ;;  %v3515_v11 = vld [vmem:[%s5190_s1 + $0x60] sm:$0xf] }
   0x4   :  { %v787_v12 = vsel %vm785_vm0, %v3532_v3, 0  ;;  %v3544_v13 = vor.u32 %v3885_v9, %v3541_v10  ;;  %v3882_v14 = vld [vmem:[%s5190_s1 + $0x6c] sm:$0xf0]  ;;  %v3880_v15 = vld [vmem:[%s5190_s1 + $0x64] sm:$0xf]  ;;  %v3889_v1 = vld [vmem:[%s5196_s0 + $0x8] sm:$0xff] }
   0x5   :  { %801 = vmatpush.bf16.msra.mxu0 %v787_v12  ;;  %v790_v16 = vsel %vm785_vm0, %v3536_v7, 0  ;;  %v793_v17 = vsel %vm785_vm0, %v3540_v8, 0  ;;  %v3516_v18 = vor.u32 %v3882_v14, %v3515_v11  ;;  %v3517_v19 = vld [vmem:[%s5190_s1 + $0x70] sm:$0xf0]  ;;  %v3523_v20 = vld [vmem:[%s5190_s1 + $0x68] sm:$0xf] }
   0x6   :  { %1130 = vmatpush.bf16.msra.mxu1 %v790_v16  ;;  %1459 = vmatpush.bf16.msra.mxu2 %v793_v17  ;;  %v796_v21 = vsel %vm785_vm0, %v3544_v13, 0  ;;  %v3520_v22 = vor.u32 %v3880_v15, %v3517_v19  ;;  %v3883_v23 = vld [vmem:[%s5190_s1 + $0x74] sm:$0xf0]  ;;  %v3881_v24 = vld [vmem:[%s5190_s1 + $0x6c] sm:$0xf]  ;;  %v3888_v0 = vld [vmem:[%s5196_s0] sm:$0xff] }
   0x7   :  { %1788 = vmatpush.bf16.msra.mxu3 %v796_v21  ;;  %v3524_v25 = vor.u32 %v3883_v23, %v3523_v20  ;;  %v3525_v26 = vld [vmem:[%s5190_s1 + $0x78] sm:$0xf0]  ;;  %v3499_v27 = vld [vmem:[%s5190_s1 + $0x40] sm:$0xf]  ;;  %v3878_v28 = vld [vmem:[%s5190_s1 + $0x4c] sm:$0xf0] }
   0x8   :  { %v3528_v29 = vor.u32 %v3881_v24, %v3525_v26  ;;  %v3876_v30 = vld [vmem:[%s5190_s1 + $0x44] sm:$0xf]  ;;  %v3501_v31 = vld [vmem:[%s5190_s1 + $0x50] sm:$0xf0]  ;;  %v3507_v32 = vld [vmem:[%s5190_s1 + $0x48] sm:$0xf]  ;;  %v3500_v33 = vor.u32 %v3878_v28, %v3499_v27 }
   0x9   :  { %802 = vmatpush.bf16.msra.mxu0 %v3516_v18  ;;  %v3879_v34 = vld [vmem:[%s5190_s1 + $0x54] sm:$0xf0]  ;;  %v3877_v35 = vld [vmem:[%s5190_s1 + $0x4c] sm:$0xf]  ;;  %v3509_v36 = vld [vmem:[%s5190_s1 + $0x58] sm:$0xf0]  ;;  %v3504_v37 = vor.u32 %v3876_v30, %v3501_v31 }
   0xa   :  { %1131 = vmatpush.bf16.msra.mxu1 %v3520_v22  ;;  %1460 = vmatpush.bf16.msra.mxu2 %v3524_v25  ;;  %v3508_v38 = vor.u32 %v3879_v34, %v3507_v32  ;;  %v3483_v39 = vld [vmem:[%s5190_s1 + $0x20] sm:$0xf]  ;;  %v3874_v40 = vld [vmem:[%s5190_s1 + $0x2c] sm:$0xf0]  ;;  %v3872_v41 = vld [vmem:[%s5190_s1 + $0x24] sm:$0xf]  ;;  %v3512_v42 = vor.u32 %v3877_v35, %v3509_v36 }
   0xb   :  { %1789 = vmatpush.bf16.msra.mxu3 %v3528_v29  ;;  %v3485_v43 = vld [vmem:[%s5190_s1 + $0x30] sm:$0xf0]  ;;  %v3491_v44 = vld [vmem:[%s5190_s1 + $0x28] sm:$0xf]  ;;  %v3875_v45 = vld [vmem:[%s5190_s1 + $0x34] sm:$0xf0]  ;;  %v3484_v48 = vor.u32 %v3874_v40, %v3483_v39 }
   0xc   :  { %v3873_v46 = vld [vmem:[%s5190_s1 + $0x2c] sm:$0xf]  ;;  %v3493_v47 = vld [vmem:[%s5190_s1 + $0x38] sm:$0xf0]  ;;  %v3488_v49 = vor.u32 %v3872_v41, %v3485_v43  ;;  %v3492_v50 = vor.u32 %v3875_v45, %v3491_v44  ;;  %v3467_v51 = vld [vmem:[%s5190_s1] sm:$0xf] }
   0xd   :  { %803 = vmatpush.bf16.msra.mxu0 %v3500_v33  ;;  %v3870_v52 = vld [vmem:[%s5190_s1 + $0xc] sm:$0xf0]  ;;  %v3868_v53 = vld [vmem:[%s5190_s1 + $0x4] sm:$0xf]  ;;  %v3496_v54 = vor.u32 %v3873_v46, %v3493_v47  ;;  %v3469_v55 = vld [vmem:[%s5190_s1 + $0x10] sm:$0xf0] }
   0xe   :  { %1132 = vmatpush.bf16.msra.mxu1 %v3504_v37  ;;  %1461 = vmatpush.bf16.msra.mxu2 %v3508_v38  ;;  %v3475_v56 = vld [vmem:[%s5190_s1 + $0x8] sm:$0xf]  ;;  %v3871_v57 = vld [vmem:[%s5190_s1 + $0x14] sm:$0xf0]  ;;  %v3869_v58 = vld [vmem:[%s5190_s1 + $0xc] sm:$0xf]  ;;  %v3468_v60 = vor.u32 %v3870_v52, %v3467_v51  ;;  %v3472_v61 = vor.u32 %v3868_v53, %v3469_v55 }
   0xf   :  { %1790 = vmatpush.bf16.msra.mxu3 %v3512_v42  ;;  %v3477_v59 = vld [vmem:[%s5190_s1 + $0x18] sm:$0xf0]  ;;  %v3476_v62 = vor.u32 %v3871_v57, %v3475_v56  ;;  %v3890_v2 = vld [vmem:[%s5196_s0 + $0x10] sm:$0xff]  ;;  %v3892_v4 = vld [vmem:[%s5196_s0 + $0x20] sm:$0xff] }
  0x10   :  { %v3480_v63 = vor.u32 %v3869_v58, %v3477_v59  ;;  %v3891_v3 = vld [vmem:[%s5196_s0 + $0x18] sm:$0xff]  ;;  %v3893_v5 = vld [vmem:[%s5196_s0 + $0x28] sm:$0xff]  ;;  %v3894_v6 = vld [vmem:[%s5196_s0 + $0x30] sm:$0xff] }
  0x11   :  { %804 = vmatpush.bf16.msra.mxu0 %v3484_v48  ;;  %v3895_v7 = vld [vmem:[%s5196_s0 + $0x38] sm:$0xff]  ;;  %v3896_v8 = vld [vmem:[%s5196_s0 + $0x40] sm:$0xff]  ;;  %v3897_v20 = vld [vmem:[%s5196_s0 + $0x48] sm:$0xff] }
  0x12   :  { %1133 = vmatpush.bf16.msra.mxu1 %v3488_v49  ;;  %1462 = vmatpush.bf16.msra.mxu2 %v3492_v50  ;;  %v4619_v18 = vld [vmem:[%s5197_s2] ss:$0 sm:$0xff]  ;;  %v3898_v40 = vld [vmem:[%s5196_s0 + $0x50] sm:$0xff] }
  0x13   :  { %1791 = vmatpush.bf16.msra.mxu3 %v3496_v54 }
  0x15   :  { %805 = vmatpush.bf16.msra.mxu0 %v3468_v60  ;;  %v3899_v60 = vld [vmem:[%s5196_s0 + $0x58] sm:$0xff] }
  0x16   :  { %1134 = vmatpush.bf16.msra.mxu1 %v3472_v61  ;;  %1463 = vmatpush.bf16.msra.mxu2 %v3476_v62 }
  0x17   :  { %1792 = vmatpush.bf16.msra.mxu3 %v3480_v63 }
  0x18   :  { %3545 = vmatmul.msk.bf16.vlgmr.msra.gmra.mxu0 %vm592_vm1, %v3888_v0 }
  0x19   :  { %3609 = vmatmul.msk.bf16.vlgmr.msra.gmra.mxu1 %vm592_vm1, %v3888_v0  ;;  %3673 = vmatmul.msk.bf16.vlgmr.msra.gmra.mxu2 %vm592_vm1, %v3888_v0 }
  0x1a   :  { %3737 = vmatmul.msk.bf16.vlgmr.msra.gmra.mxu3 %vm592_vm1, %v3888_v0 }
  0x28   :  { %3546 = vmatmul.msk.bf16.gmra.mxu0 %vm592_vm1, %v3889_v1 }
  0x29   :  { %3610 = vmatmul.msk.bf16.gmra.mxu1 %vm592_vm1, %v3889_v1  ;;  %3674 = vmatmul.msk.bf16.gmra.mxu2 %vm592_vm1, %v3889_v1 }
  0x2a   :  { %3738 = vmatmul.msk.bf16.gmra.mxu3 %vm592_vm1, %v3889_v1 }
  0x38   :  { %3547 = vmatmul.msk.bf16.gmra.mxu0 %vm592_vm1, %v3890_v2 }
  0x39   :  { %3611 = vmatmul.msk.bf16.gmra.mxu1 %vm592_vm1, %v3890_v2  ;;  %3675 = vmatmul.msk.bf16.gmra.mxu2 %vm592_vm1, %v3890_v2 }
  0x3a   :  { %3739 = vmatmul.msk.bf16.gmra.mxu3 %vm592_vm1, %v3890_v2 }
  0x48   :  { %3548 = vmatmul.msk.bf16.gmra.mxu0 %vm592_vm1, %v3891_v3 }
  0x49   :  { %3612 = vmatmul.msk.bf16.gmra.mxu1 %vm592_vm1, %v3891_v3  ;;  %3676 = vmatmul.msk.bf16.gmra.mxu2 %vm592_vm1, %v3891_v3 }
  0x4a   :  { %3740 = vmatmul.msk.bf16.gmra.mxu3 %vm592_vm1, %v3891_v3 }
  0x58   :  { %3549 = vmatmul.msk.bf16.gmra.mxu0 %vm592_vm1, %v3892_v4 }
  0x59   :  { %3613 = vmatmul.msk.bf16.gmra.mxu1 %vm592_vm1, %v3892_v4  ;;  %3677 = vmatmul.msk.bf16.gmra.mxu2 %vm592_vm1, %v3892_v4 }
  0x5a   :  { %3741 = vmatmul.msk.bf16.gmra.mxu3 %vm592_vm1, %v3892_v4 }
  0x68   :  { %3550 = vmatmul.msk.bf16.gmra.mxu0 %vm592_vm1, %v3893_v5 }
  0x69   :  { %3614 = vmatmul.msk.bf16.gmra.mxu1 %vm592_vm1, %v3893_v5  ;;  %3678 = vmatmul.msk.bf16.gmra.mxu2 %vm592_vm1, %v3893_v5 }
  0x6a   :  { %3742 = vmatmul.msk.bf16.gmra.mxu3 %vm592_vm1, %v3893_v5 }
  0x78   :  { %3551 = vmatmul.msk.bf16.gmra.mxu0 %vm592_vm1, %v3894_v6 }
  0x79   :  { %3615 = vmatmul.msk.bf16.gmra.mxu1 %vm592_vm1, %v3894_v6  ;;  %3679 = vmatmul.msk.bf16.gmra.mxu2 %vm592_vm1, %v3894_v6 }
  0x7a   :  { %3743 = vmatmul.msk.bf16.gmra.mxu3 %vm592_vm1, %v3894_v6 }
  0x88   :  { %3552 = vmatmul.msk.bf16.gmra.mxu0 %vm592_vm1, %v3895_v7 }
  0x89   :  { %3616 = vmatmul.msk.bf16.gmra.mxu1 %vm592_vm1, %v3895_v7  ;;  %3680 = vmatmul.msk.bf16.gmra.mxu2 %vm592_vm1, %v3895_v7 }
  0x8a   :  { %3744 = vmatmul.msk.bf16.gmra.mxu3 %vm592_vm1, %v3895_v7 }
  0x95   :  { %v807_v9 = vpop.f32.mrf.mxu0 }
  0x96   :  { %v1136_v10 = vpop.f32.mrf.mxu1 }
  0x97   :  { %v2114_v15 = vmax.f32 %v807_v9, %v1136_v10 }
  0x98   :  { %3553 = vmatmul.msk.bf16.gmra.mxu0 %vm592_vm1, %v3896_v8 }
  0x99   :  { %3617 = vmatmul.msk.bf16.gmra.mxu1 %vm592_vm1, %v3896_v8  ;;  %3681 = vmatmul.msk.bf16.gmra.mxu2 %vm592_vm1, %v3896_v8 }
  0x9a   :  { %3745 = vmatmul.msk.bf16.gmra.mxu3 %vm592_vm1, %v3896_v8 }
  0x9c   :  { %v1465_v11 = vpop.f32.mrf.mxu2 }
  0x9d   :  { %v1794_v12 = vpop.f32.mrf.mxu3  ;;  %v809_v13 = vpop.f32.mrf.mxu0 }
  0x9e   :  { %v1138_v14 = vpop.f32.mrf.mxu1  ;;  %v2242_v16 = vmax.f32 %v1465_v11, %v1794_v12 }
  0x9f   :  { %v2115_v23 = vmax.f32 %v809_v13, %v1138_v14 }
  0xa0   :  { %v2370_v17 = vmax.f32 %v2114_v15, %v2242_v16  ;;  %v3900_v16 = vld [vmem:[%s5196_s0 + $0x60] sm:$0xff] }
  0xa2   :  { %v2501_v26 = vadd.f32 %v4619_v18, %v2370_v17 }
  0xa4   :  { %v1467_v19 = vpop.f32.mrf.mxu2  ;;  %v2629_v29 = vmax.f32 %v2501_v26, 0.0 }
  0xa5   :  { %v1796_v21 = vpop.f32.mrf.mxu3  ;;  %v812_v22 = vpop.f32.mrf.mxu0 }
  0xa6   :  { %v2243_v24 = vmax.f32 %v1467_v19, %v1796_v21  ;;  %v1141_v25 = vpop.f32.mrf.mxu1 }
  0xa7   :  { %v2116_v36 = vmax.f32 %v812_v22, %v1141_v25 }
  0xa8   :  { %v2371_v27 = vmax.f32 %v2115_v23, %v2243_v24  ;;  %3554 = vmatmul.msk.bf16.gmra.mxu0 %vm592_vm1, %v3897_v20 }
  0xa9   :  { %3618 = vmatmul.msk.bf16.gmra.mxu1 %vm592_vm1, %v3897_v20  ;;  %3682 = vmatmul.msk.bf16.gmra.mxu2 %vm592_vm1, %v3897_v20 }
  0xaa   :  { %v2502_v28 = vadd.f32 %v4619_v18, %v2371_v27  ;;  %3746 = vmatmul.msk.bf16.gmra.mxu3 %vm592_vm1, %v3897_v20 }
  0xac   :  { %v2630_v30 = vmax.f32 %v2502_v28, 0.0  ;;  %v1470_v31 = vpop.f32.mrf.mxu2 }
  0xad   :  { %v1799_v32 = vpop.f32.mrf.mxu3  ;;  %v814_v33 = vpop.f32.mrf.mxu0 }
  0xae   :  { %v3972_v34 = vpack.c.bf16 %v2630_v30, %v2629_v29  ;;  %v1143_v35 = vpop.f32.mrf.mxu1  ;;  %v2244_v37 = vmax.f32 %v1470_v31, %v1799_v32 }
  0xaf   :  { %v2117_v43 = vmax.f32 %v814_v33, %v1143_v35 }
  0xb0   :  { %3973 = vst [vmem:[#allocation2] sm:$0xff] %v3972_v34   ;;  %v2372_v38 = vmax.f32 %v2116_v36, %v2244_v37  ;;  %v3901_v37 = vld [vmem:[%s5196_s0 + $0x68] sm:$0xff] }
  0xb2   :  { %v2503_v46 = vadd.f32 %v4619_v18, %v2372_v38 }
  0xb4   :  { %v1472_v39 = vpop.f32.mrf.mxu2  ;;  %v2631_v49 = vmax.f32 %v2503_v46, 0.0 }
  0xb5   :  { %v1801_v41 = vpop.f32.mrf.mxu3  ;;  %v817_v42 = vpop.f32.mrf.mxu0 }
  0xb6   :  { %v2245_v44 = vmax.f32 %v1472_v39, %v1801_v41  ;;  %v1146_v45 = vpop.f32.mrf.mxu1 }
  0xb7   :  { %v2118_v56 = vmax.f32 %v817_v42, %v1146_v45 }
  0xb8   :  { %v2373_v47 = vmax.f32 %v2117_v43, %v2245_v44  ;;  %3555 = vmatmul.msk.bf16.gmra.mxu0 %vm592_vm1, %v3898_v40 }
  0xb9   :  { %3619 = vmatmul.msk.bf16.gmra.mxu1 %vm592_vm1, %v3898_v40  ;;  %3683 = vmatmul.msk.bf16.gmra.mxu2 %vm592_vm1, %v3898_v40 }
  0xba   :  { %v2504_v48 = vadd.f32 %v4619_v18, %v2373_v47  ;;  %3747 = vmatmul.msk.bf16.gmra.mxu3 %vm592_vm1, %v3898_v40 }
  0xbc   :  { %v2632_v50 = vmax.f32 %v2504_v48, 0.0  ;;  %v1475_v51 = vpop.f32.mrf.mxu2 }
  0xbd   :  { %v1804_v52 = vpop.f32.mrf.mxu3  ;;  %v819_v53 = vpop.f32.mrf.mxu0 }
  0xbe   :  { %v3977_v54 = vpack.c.bf16 %v2632_v50, %v2631_v49  ;;  %v1148_v55 = vpop.f32.mrf.mxu1  ;;  %v2246_v57 = vmax.f32 %v1475_v51, %v1804_v52 }
  0xbf   :  { %v2119_v63 = vmax.f32 %v819_v53, %v1148_v55 }
  0xc0   :  { %4289 = vst [vmem:[#allocation2 + $0x8] sm:$0xff] %v3977_v54   ;;  %v2374_v58 = vmax.f32 %v2118_v56, %v2246_v57  ;;  %v3902_v57 = vld [vmem:[%s5196_s0 + $0x70] sm:$0xff] }
  0xc2   :  { %v2505_v2 = vadd.f32 %v4619_v18, %v2374_v58 }
  0xc4   :  { %v1477_v59 = vpop.f32.mrf.mxu2  ;;  %v2633_v5 = vmax.f32 %v2505_v2, 0.0 }
  0xc5   :  { %v1806_v61 = vpop.f32.mrf.mxu3  ;;  %v822_v62 = vpop.f32.mrf.mxu0 }
  0xc6   :  { %v2247_v0 = vmax.f32 %v1477_v59, %v1806_v61  ;;  %v1151_v1 = vpop.f32.mrf.mxu1 }
  0xc7   :  { %v2120_v12 = vmax.f32 %v822_v62, %v1151_v1 }
  0xc8   :  { %v2375_v3 = vmax.f32 %v2119_v63, %v2247_v0  ;;  %3556 = vmatmul.msk.bf16.gmra.mxu0 %vm592_vm1, %v3899_v60 }
  0xc9   :  { %3620 = vmatmul.msk.bf16.gmra.mxu1 %vm592_vm1, %v3899_v60  ;;  %3684 = vmatmul.msk.bf16.gmra.mxu2 %vm592_vm1, %v3899_v60 }
  0xca   :  { %v2506_v4 = vadd.f32 %v4619_v18, %v2375_v3  ;;  %3748 = vmatmul.msk.bf16.gmra.mxu3 %vm592_vm1, %v3899_v60 }
  0xcc   :  { %v2634_v6 = vmax.f32 %v2506_v4, 0.0  ;;  %v1480_v7 = vpop.f32.mrf.mxu2 }
  0xcd   :  { %v1809_v8 = vpop.f32.mrf.mxu3  ;;  %v824_v9 = vpop.f32.mrf.mxu0 }
  0xce   :  { %v3982_v10 = vpack.c.bf16 %v2634_v6, %v2633_v5  ;;  %v1153_v11 = vpop.f32.mrf.mxu1  ;;  %v2248_v13 = vmax.f32 %v1480_v7, %v1809_v8 }
  0xcf   :  { %v2121_v20 = vmax.f32 %v824_v9, %v1153_v11 }
  0xd0   :  { %4290 = vst [vmem:[#allocation2 + $0x10] sm:$0xff] %v3982_v10   ;;  %v2376_v14 = vmax.f32 %v2120_v12, %v2248_v13  ;;  %v3903_v13 = vld [vmem:[%s5196_s0 + $0x78] sm:$0xff] }
  0xd2   :  { %v2507_v23 = vadd.f32 %v4619_v18, %v2376_v14 }
  0xd4   :  { %v1482_v15 = vpop.f32.mrf.mxu2  ;;  %v2635_v26 = vmax.f32 %v2507_v23, 0.0 }
  0xd5   :  { %v1811_v17 = vpop.f32.mrf.mxu3  ;;  %v827_v19 = vpop.f32.mrf.mxu0 }
  0xd6   :  { %v2249_v21 = vmax.f32 %v1482_v15, %v1811_v17  ;;  %v1156_v22 = vpop.f32.mrf.mxu1 }
  0xd7   :  { %v2122_v33 = vmax.f32 %v827_v19, %v1156_v22 }
  0xd8   :  { %v2377_v24 = vmax.f32 %v2121_v20, %v2249_v21  ;;  %3557 = vmatmul.msk.bf16.gmra.mxu0 %vm592_vm1, %v3900_v16 }
  0xd9   :  { %3621 = vmatmul.msk.bf16.gmra.mxu1 %vm592_vm1, %v3900_v16  ;;  %3685 = vmatmul.msk.bf16.gmra.mxu2 %vm592_vm1, %v3900_v16 }
  0xda   :  { %v2508_v25 = vadd.f32 %v4619_v18, %v2377_v24  ;;  %3749 = vmatmul.msk.bf16.gmra.mxu3 %vm592_vm1, %v3900_v16 }
  0xdc   :  { %v2636_v27 = vmax.f32 %v2508_v25, 0.0  ;;  %v1485_v28 = vpop.f32.mrf.mxu2 }
  0xdd   :  { %v1814_v29 = vpop.f32.mrf.mxu3  ;;  %v829_v30 = vpop.f32.mrf.mxu0 }
  0xde   :  { %v3987_v31 = vpack.c.bf16 %v2636_v27, %v2635_v26  ;;  %v1158_v32 = vpop.f32.mrf.mxu1  ;;  %v2250_v34 = vmax.f32 %v1485_v28, %v1814_v29 }
  0xdf   :  { %v2123_v40 = vmax.f32 %v829_v30, %v1158_v32 }
  0xe0   :  { %4291 = vst [vmem:[#allocation2 + $0x18] sm:$0xff] %v3987_v31   ;;  %v2378_v35 = vmax.f32 %v2122_v33, %v2250_v34  ;;  %v3904_v34 = vld [vmem:[%s5196_s0 + $0x80] sm:$0xff] }
  0xe2   :  { %v2509_v43 = vadd.f32 %v4619_v18, %v2378_v35 }
  0xe4   :  { %v1487_v36 = vpop.f32.mrf.mxu2  ;;  %v2637_v46 = vmax.f32 %v2509_v43, 0.0 }
  0xe5   :  { %v1816_v38 = vpop.f32.mrf.mxu3  ;;  %v832_v39 = vpop.f32.mrf.mxu0 }
  0xe6   :  { %v2251_v41 = vmax.f32 %v1487_v36, %v1816_v38  ;;  %v1161_v42 = vpop.f32.mrf.mxu1 }
  0xe7   :  { %v2124_v53 = vmax.f32 %v832_v39, %v1161_v42 }
  0xe8   :  { %v2379_v44 = vmax.f32 %v2123_v40, %v2251_v41  ;;  %3558 = vmatmul.msk.bf16.gmra.mxu0 %vm592_vm1, %v3901_v37 }
  0xe9   :  { %3622 = vmatmul.msk.bf16.gmra.mxu1 %vm592_vm1, %v3901_v37  ;;  %3686 = vmatmul.msk.bf16.gmra.mxu2 %vm592_vm1, %v3901_v37 }
  0xea   :  { %v2510_v45 = vadd.f32 %v4619_v18, %v2379_v44  ;;  %3750 = vmatmul.msk.bf16.gmra.mxu3 %vm592_vm1, %v3901_v37 }
  0xec   :  { %v2638_v47 = vmax.f32 %v2510_v45, 0.0  ;;  %v1490_v48 = vpop.f32.mrf.mxu2 }
  0xed   :  { %v1819_v49 = vpop.f32.mrf.mxu3  ;;  %v834_v50 = vpop.f32.mrf.mxu0 }
  0xee   :  { %v3992_v51 = vpack.c.bf16 %v2638_v47, %v2637_v46  ;;  %v1163_v52 = vpop.f32.mrf.mxu1  ;;  %v2252_v54 = vmax.f32 %v1490_v48, %v1819_v49 }
  0xef   :  { %v2125_v60 = vmax.f32 %v834_v50, %v1163_v52 }
  0xf0   :  { %4292 = vst [vmem:[#allocation2 + $0x20] sm:$0xff] %v3992_v51   ;;  %v2380_v55 = vmax.f32 %v2124_v53, %v2252_v54  ;;  %v3905_v54 = vld [vmem:[%s5196_s0 + $0x88] sm:$0xff] }
  0xf2   :  { %v2511_v63 = vadd.f32 %v4619_v18, %v2380_v55 }
  0xf4   :  { %v1492_v56 = vpop.f32.mrf.mxu2  ;;  %v2639_v2 = vmax.f32 %v2511_v63, 0.0 }
  0xf5   :  { %v1821_v58 = vpop.f32.mrf.mxu3  ;;  %v837_v59 = vpop.f32.mrf.mxu0 }
  0xf6   :  { %v2253_v61 = vmax.f32 %v1492_v56, %v1821_v58  ;;  %v1166_v62 = vpop.f32.mrf.mxu1 }
  0xf7   :  { %v2126_v9 = vmax.f32 %v837_v59, %v1166_v62 }
  0xf8   :  { %v2381_v0 = vmax.f32 %v2125_v60, %v2253_v61  ;;  %3559 = vmatmul.msk.bf16.gmra.mxu0 %vm592_vm1, %v3902_v57 }
  0xf9   :  { %3623 = vmatmul.msk.bf16.gmra.mxu1 %vm592_vm1, %v3902_v57  ;;  %3687 = vmatmul.msk.bf16.gmra.mxu2 %vm592_vm1, %v3902_v57 }
  0xfa   :  { %v2512_v1 = vadd.f32 %v4619_v18, %v2381_v0  ;;  %3751 = vmatmul.msk.bf16.gmra.mxu3 %vm592_vm1, %v3902_v57 }
  0xfc   :  { %v2640_v3 = vmax.f32 %v2512_v1, 0.0  ;;  %v1495_v4 = vpop.f32.mrf.mxu2 }
  0xfd   :  { %v1824_v5 = vpop.f32.mrf.mxu3  ;;  %v839_v6 = vpop.f32.mrf.mxu0 }
  0xfe   :  { %v3997_v7 = vpack.c.bf16 %v2640_v3, %v2639_v2  ;;  %v1168_v8 = vpop.f32.mrf.mxu1  ;;  %v2254_v10 = vmax.f32 %v1495_v4, %v1824_v5 }
  0xff   :  { %v2127_v16 = vmax.f32 %v839_v6, %v1168_v8 }
 0x100   :  { %4293 = vst [vmem:[#allocation2 + $0x28] sm:$0xff] %v3997_v7   ;;  %v2382_v11 = vmax.f32 %v2126_v9, %v2254_v10  ;;  %v3906_v10 = vld [vmem:[%s5196_s0 + $0x90] sm:$0xff] }
 0x102   :  { %v2513_v20 = vadd.f32 %v4619_v18, %v2382_v11 }
 0x104   :  { %v1497_v12 = vpop.f32.mrf.mxu2  ;;  %v2641_v23 = vmax.f32 %v2513_v20, 0.0 }
 0x105   :  { %v1826_v14 = vpop.f32.mrf.mxu3  ;;  %v842_v15 = vpop.f32.mrf.mxu0 }
 0x106   :  { %v2255_v17 = vmax.f32 %v1497_v12, %v1826_v14  ;;  %v1171_v19 = vpop.f32.mrf.mxu1 }
 0x107   :  { %v2128_v30 = vmax.f32 %v842_v15, %v1171_v19 }
 0x108   :  { %v2383_v21 = vmax.f32 %v2127_v16, %v2255_v17  ;;  %3560 = vmatmul.msk.bf16.gmra.mxu0 %vm592_vm1, %v3903_v13 }
 0x109   :  { %3624 = vmatmul.msk.bf16.gmra.mxu1 %vm592_vm1, %v3903_v13  ;;  %3688 = vmatmul.msk.bf16.gmra.mxu2 %vm592_vm1, %v3903_v13 }
 0x10a   :  { %v2514_v22 = vadd.f32 %v4619_v18, %v2383_v21  ;;  %3752 = vmatmul.msk.bf16.gmra.mxu3 %vm592_vm1, %v3903_v13 }
 0x10c   :  { %v2642_v24 = vmax.f32 %v2514_v22, 0.0  ;;  %v1500_v25 = vpop.f32.mrf.mxu2 }
 0x10d   :  { %v1829_v26 = vpop.f32.mrf.mxu3  ;;  %v844_v27 = vpop.f32.mrf.mxu0 }
 0x10e   :  { %v4002_v28 = vpack.c.bf16 %v2642_v24, %v2641_v23  ;;  %v1173_v29 = vpop.f32.mrf.mxu1  ;;  %v2256_v31 = vmax.f32 %v1500_v25, %v1829_v26 }
 0x10f   :  { %v2129_v37 = vmax.f32 %v844_v27, %v1173_v29 }
 0x110   :  { %4294 = vst [vmem:[#allocation2 + $0x30] sm:$0xff] %v4002_v28   ;;  %v2384_v32 = vmax.f32 %v2128_v30, %v2256_v31  ;;  %v3907_v31 = vld [vmem:[%s5196_s0 + $0x98] sm:$0xff] }
 0x112   :  { %v2515_v40 = vadd.f32 %v4619_v18, %v2384_v32 }
 0x114   :  { %v1502_v33 = vpop.f32.mrf.mxu2  ;;  %v2643_v43 = vmax.f32 %v2515_v40, 0.0 }
 0x115   :  { %v1831_v35 = vpop.f32.mrf.mxu3  ;;  %v847_v36 = vpop.f32.mrf.mxu0 }
 0x116   :  { %v2257_v38 = vmax.f32 %v1502_v33, %v1831_v35  ;;  %v1176_v39 = vpop.f32.mrf.mxu1 }
 0x117   :  { %v2130_v50 = vmax.f32 %v847_v36, %v1176_v39 }
 0x118   :  { %v2385_v41 = vmax.f32 %v2129_v37, %v2257_v38  ;;  %3561 = vmatmul.msk.bf16.gmra.mxu0 %vm592_vm1, %v3904_v34 }
 0x119   :  { %3625 = vmatmul.msk.bf16.gmra.mxu1 %vm592_vm1, %v3904_v34  ;;  %3689 = vmatmul.msk.bf16.gmra.mxu2 %vm592_vm1, %v3904_v34 }
 0x11a   :  { %v2516_v42 = vadd.f32 %v4619_v18, %v2385_v41  ;;  %3753 = vmatmul.msk.bf16.gmra.mxu3 %vm592_vm1, %v3904_v34 }
 0x11c   :  { %v2644_v44 = vmax.f32 %v2516_v42, 0.0  ;;  %v1505_v45 = vpop.f32.mrf.mxu2 }
 0x11d   :  { %v1834_v46 = vpop.f32.mrf.mxu3  ;;  %v849_v47 = vpop.f32.mrf.mxu0 }
 0x11e   :  { %v4007_v48 = vpack.c.bf16 %v2644_v44, %v2643_v43  ;;  %v1178_v49 = vpop.f32.mrf.mxu1  ;;  %v2258_v51 = vmax.f32 %v1505_v45, %v1834_v46 }
 0x11f   :  { %v2131_v57 = vmax.f32 %v849_v47, %v1178_v49 }
 0x120   :  { %4295 = vst [vmem:[#allocation2 + $0x38] sm:$0xff] %v4007_v48   ;;  %v2386_v52 = vmax.f32 %v2130_v50, %v2258_v51  ;;  %v3908_v51 = vld [vmem:[%s5196_s0 + $0xa0] sm:$0xff] }
 0x122   :  { %v2517_v60 = vadd.f32 %v4619_v18, %v2386_v52 }
 0x124   :  { %v1507_v53 = vpop.f32.mrf.mxu2  ;;  %v2645_v63 = vmax.f32 %v2517_v60, 0.0 }
 0x125   :  { %v1836_v55 = vpop.f32.mrf.mxu3  ;;  %v852_v56 = vpop.f32.mrf.mxu0 }
 0x126   :  { %v2259_v58 = vmax.f32 %v1507_v53, %v1836_v55  ;;  %v1181_v59 = vpop.f32.mrf.mxu1 }
 0x127   :  { %v2132_v6 = vmax.f32 %v852_v56, %v1181_v59 }
 0x128   :  { %v2387_v61 = vmax.f32 %v2131_v57, %v2259_v58  ;;  %3562 = vmatmul.msk.bf16.gmra.mxu0 %vm592_vm1, %v3905_v54 }
 0x129   :  { %3626 = vmatmul.msk.bf16.gmra.mxu1 %vm592_vm1, %v3905_v54  ;;  %3690 = vmatmul.msk.bf16.gmra.mxu2 %vm592_vm1, %v3905_v54 }
 0x12a   :  { %v2518_v62 = vadd.f32 %v4619_v18, %v2387_v61  ;;  %3754 = vmatmul.msk.bf16.gmra.mxu3 %vm592_vm1, %v3905_v54 }
 0x12c   :  { %v2646_v0 = vmax.f32 %v2518_v62, 0.0  ;;  %v1510_v1 = vpop.f32.mrf.mxu2 }
 0x12d   :  { %v1839_v2 = vpop.f32.mrf.mxu3  ;;  %v854_v3 = vpop.f32.mrf.mxu0 }
 0x12e   :  { %v4012_v4 = vpack.c.bf16 %v2646_v0, %v2645_v63  ;;  %v1183_v5 = vpop.f32.mrf.mxu1  ;;  %v2260_v7 = vmax.f32 %v1510_v1, %v1839_v2 }
 0x12f   :  { %v2133_v13 = vmax.f32 %v854_v3, %v1183_v5 }
 0x130   :  { %4296 = vst [vmem:[#allocation2 + $0x40] sm:$0xff] %v4012_v4   ;;  %v2388_v8 = vmax.f32 %v2132_v6, %v2260_v7  ;;  %v3909_v7 = vld [vmem:[%s5196_s0 + $0xa8] sm:$0xff] }
 0x132   :  { %v2519_v16 = vadd.f32 %v4619_v18, %v2388_v8 }
 0x134   :  { %v1512_v9 = vpop.f32.mrf.mxu2  ;;  %v2647_v20 = vmax.f32 %v2519_v16, 0.0 }
 0x135   :  { %v1841_v11 = vpop.f32.mrf.mxu3  ;;  %v857_v12 = vpop.f32.mrf.mxu0 }
 0x136   :  { %v2261_v14 = vmax.f32 %v1512_v9, %v1841_v11  ;;  %v1186_v15 = vpop.f32.mrf.mxu1 }
 0x137   :  { %v2134_v27 = vmax.f32 %v857_v12, %v1186_v15 }
 0x138   :  { %v2389_v17 = vmax.f32 %v2133_v13, %v2261_v14  ;;  %3563 = vmatmul.msk.bf16.gmra.mxu0 %vm592_vm1, %v3906_v10 }
 0x139   :  { %3627 = vmatmul.msk.bf16.gmra.mxu1 %vm592_vm1, %v3906_v10  ;;  %3691 = vmatmul.msk.bf16.gmra.mxu2 %vm592_vm1, %v3906_v10 }
 0x13a   :  { %v2520_v19 = vadd.f32 %v4619_v18, %v2389_v17  ;;  %3755 = vmatmul.msk.bf16.gmra.mxu3 %vm592_vm1, %v3906_v10 }
 0x13c   :  { %v2648_v21 = vmax.f32 %v2520_v19, 0.0  ;;  %v1515_v22 = vpop.f32.mrf.mxu2 }
 0x13d   :  { %v1844_v23 = vpop.f32.mrf.mxu3  ;;  %v859_v24 = vpop.f32.mrf.mxu0 }
 0x13e   :  { %v4017_v25 = vpack.c.bf16 %v2648_v21, %v2647_v20  ;;  %v1188_v26 = vpop.f32.mrf.mxu1  ;;  %v2262_v28 = vmax.f32 %v1515_v22, %v1844_v23 }
 0x13f   :  { %v2135_v34 = vmax.f32 %v859_v24, %v1188_v26 }
 0x140   :  { %4297 = vst [vmem:[#allocation2 + $0x48] sm:$0xff] %v4017_v25   ;;  %v2390_v29 = vmax.f32 %v2134_v27, %v2262_v28  ;;  %v3910_v28 = vld [vmem:[%s5196_s0 + $0xb0] sm:$0xff] }
 0x142   :  { %v2521_v37 = vadd.f32 %v4619_v18, %v2390_v29 }
 0x144   :  { %v1517_v30 = vpop.f32.mrf.mxu2  ;;  %v2649_v40 = vmax.f32 %v2521_v37, 0.0 }
 0x145   :  { %v1846_v32 = vpop.f32.mrf.mxu3  ;;  %v862_v33 = vpop.f32.mrf.mxu0 }
 0x146   :  { %v2263_v35 = vmax.f32 %v1517_v30, %v1846_v32  ;;  %v1191_v36 = vpop.f32.mrf.mxu1 }
 0x147   :  { %v2136_v47 = vmax.f32 %v862_v33, %v1191_v36 }
 0x148   :  { %v2391_v38 = vmax.f32 %v2135_v34, %v2263_v35  ;;  %3564 = vmatmul.msk.bf16.gmra.mxu0 %vm592_vm1, %v3907_v31 }
 0x149   :  { %3628 = vmatmul.msk.bf16.gmra.mxu1 %vm592_vm1, %v3907_v31  ;;  %3692 = vmatmul.msk.bf16.gmra.mxu2 %vm592_vm1, %v3907_v31 }
 0x14a   :  { %v2522_v39 = vadd.f32 %v4619_v18, %v2391_v38  ;;  %3756 = vmatmul.msk.bf16.gmra.mxu3 %vm592_vm1, %v3907_v31 }
 0x14c   :  { %v2650_v41 = vmax.f32 %v2522_v39, 0.0  ;;  %v1520_v42 = vpop.f32.mrf.mxu2 }
 0x14d   :  { %v1849_v43 = vpop.f32.mrf.mxu3  ;;  %v864_v44 = vpop.f32.mrf.mxu0 }
 0x14e   :  { %v4022_v45 = vpack.c.bf16 %v2650_v41, %v2649_v40  ;;  %v1193_v46 = vpop.f32.mrf.mxu1  ;;  %v2264_v48 = vmax.f32 %v1520_v42, %v1849_v43 }
 0x14f   :  { %v2137_v54 = vmax.f32 %v864_v44, %v1193_v46 }
 0x150   :  { %4298 = vst [vmem:[#allocation2 + $0x50] sm:$0xff] %v4022_v45   ;;  %v2392_v49 = vmax.f32 %v2136_v47, %v2264_v48  ;;  %v3911_v48 = vld [vmem:[%s5196_s0 + $0xb8] sm:$0xff] }
 0x152   :  { %v2523_v57 = vadd.f32 %v4619_v18, %v2392_v49 }
 0x154   :  { %v1522_v50 = vpop.f32.mrf.mxu2  ;;  %v2651_v60 = vmax.f32 %v2523_v57, 0.0 }
 0x155   :  { %v1851_v52 = vpop.f32.mrf.mxu3  ;;  %v867_v53 = vpop.f32.mrf.mxu0 }
 0x156   :  { %v2265_v55 = vmax.f32 %v1522_v50, %v1851_v52  ;;  %v1196_v56 = vpop.f32.mrf.mxu1 }
 0x157   :  { %v2138_v3 = vmax.f32 %v867_v53, %v1196_v56 }
 0x158   :  { %v2393_v58 = vmax.f32 %v2137_v54, %v2265_v55  ;;  %3565 = vmatmul.msk.bf16.gmra.mxu0 %vm592_vm1, %v3908_v51 }
 0x159   :  { %3629 = vmatmul.msk.bf16.gmra.mxu1 %vm592_vm1, %v3908_v51  ;;  %3693 = vmatmul.msk.bf16.gmra.mxu2 %vm592_vm1, %v3908_v51 }
 0x15a   :  { %v2524_v59 = vadd.f32 %v4619_v18, %v2393_v58  ;;  %3757 = vmatmul.msk.bf16.gmra.mxu3 %vm592_vm1, %v3908_v51 }
 0x15c   :  { %v2652_v61 = vmax.f32 %v2524_v59, 0.0  ;;  %v1525_v62 = vpop.f32.mrf.mxu2 }
 0x15d   :  { %v1854_v63 = vpop.f32.mrf.mxu3  ;;  %v869_v0 = vpop.f32.mrf.mxu0 }
 0x15e   :  { %v4027_v1 = vpack.c.bf16 %v2652_v61, %v2651_v60  ;;  %v1198_v2 = vpop.f32.mrf.mxu1  ;;  %v2266_v4 = vmax.f32 %v1525_v62, %v1854_v63 }
 0x15f   :  { %v2139_v10 = vmax.f32 %v869_v0, %v1198_v2 }
 0x160   :  { %4299 = vst [vmem:[#allocation2 + $0x58] sm:$0xff] %v4027_v1   ;;  %v2394_v5 = vmax.f32 %v2138_v3, %v2266_v4  ;;  %v3912_v4 = vld [vmem:[%s5196_s0 + $0xc0] sm:$0xff] }
 0x162   :  { %v2525_v13 = vadd.f32 %v4619_v18, %v2394_v5 }
 0x164   :  { %v1527_v6 = vpop.f32.mrf.mxu2  ;;  %v2653_v16 = vmax.f32 %v2525_v13, 0.0 }
 0x165   :  { %v1856_v8 = vpop.f32.mrf.mxu3  ;;  %v872_v9 = vpop.f32.mrf.mxu0 }
 0x166   :  { %v2267_v11 = vmax.f32 %v1527_v6, %v1856_v8  ;;  %v1201_v12 = vpop.f32.mrf.mxu1 }
 0x167   :  { %v2140_v24 = vmax.f32 %v872_v9, %v1201_v12 }
 0x168   :  { %v2395_v14 = vmax.f32 %v2139_v10, %v2267_v11  ;;  %3566 = vmatmul.msk.bf16.gmra.mxu0 %vm592_vm1, %v3909_v7 }
 0x169   :  { %3630 = vmatmul.msk.bf16.gmra.mxu1 %vm592_vm1, %v3909_v7  ;;  %3694 = vmatmul.msk.bf16.gmra.mxu2 %vm592_vm1, %v3909_v7 }
 0x16a   :  { %v2526_v15 = vadd.f32 %v4619_v18, %v2395_v14  ;;  %3758 = vmatmul.msk.bf16.gmra.mxu3 %vm592_vm1, %v3909_v7 }
 0x16c   :  { %v2654_v17 = vmax.f32 %v2526_v15, 0.0  ;;  %v1530_v19 = vpop.f32.mrf.mxu2 }
 0x16d   :  { %v1859_v20 = vpop.f32.mrf.mxu3  ;;  %v874_v21 = vpop.f32.mrf.mxu0 }
 0x16e   :  { %v4032_v22 = vpack.c.bf16 %v2654_v17, %v2653_v16  ;;  %v1203_v23 = vpop.f32.mrf.mxu1  ;;  %v2268_v25 = vmax.f32 %v1530_v19, %v1859_v20 }
 0x16f   :  { %v2141_v31 = vmax.f32 %v874_v21, %v1203_v23 }
 0x170   :  { %4300 = vst [vmem:[#allocation2 + $0x60] sm:$0xff] %v4032_v22   ;;  %v2396_v26 = vmax.f32 %v2140_v24, %v2268_v25  ;;  %v3913_v25 = vld [vmem:[%s5196_s0 + $0xc8] sm:$0xff] }
 0x172   :  { %v2527_v34 = vadd.f32 %v4619_v18, %v2396_v26 }
 0x174   :  { %v1532_v27 = vpop.f32.mrf.mxu2  ;;  %v2655_v37 = vmax.f32 %v2527_v34, 0.0 }
 0x175   :  { %v1861_v29 = vpop.f32.mrf.mxu3  ;;  %v877_v30 = vpop.f32.mrf.mxu0 }
 0x176   :  { %v2269_v32 = vmax.f32 %v1532_v27, %v1861_v29  ;;  %v1206_v33 = vpop.f32.mrf.mxu1 }
 0x177   :  { %v2142_v44 = vmax.f32 %v877_v30, %v1206_v33 }
 0x178   :  { %v2397_v35 = vmax.f32 %v2141_v31, %v2269_v32  ;;  %3567 = vmatmul.msk.bf16.gmra.mxu0 %vm592_vm1, %v3910_v28 }
 0x179   :  { %3631 = vmatmul.msk.bf16.gmra.mxu1 %vm592_vm1, %v3910_v28  ;;  %3695 = vmatmul.msk.bf16.gmra.mxu2 %vm592_vm1, %v3910_v28 }
 0x17a   :  { %v2528_v36 = vadd.f32 %v4619_v18, %v2397_v35  ;;  %3759 = vmatmul.msk.bf16.gmra.mxu3 %vm592_vm1, %v3910_v28 }
 0x17c   :  { %v2656_v38 = vmax.f32 %v2528_v36, 0.0  ;;  %v1535_v39 = vpop.f32.mrf.mxu2 }
 0x17d   :  { %v1864_v40 = vpop.f32.mrf.mxu3  ;;  %v879_v41 = vpop.f32.mrf.mxu0 }
 0x17e   :  { %v4037_v42 = vpack.c.bf16 %v2656_v38, %v2655_v37  ;;  %v1208_v43 = vpop.f32.mrf.mxu1  ;;  %v2270_v45 = vmax.f32 %v1535_v39, %v1864_v40 }
 0x17f   :  { %v2143_v51 = vmax.f32 %v879_v41, %v1208_v43 }
 0x180   :  { %4301 = vst [vmem:[#allocation2 + $0x68] sm:$0xff] %v4037_v42   ;;  %v2398_v46 = vmax.f32 %v2142_v44, %v2270_v45  ;;  %v3914_v45 = vld [vmem:[%s5196_s0 + $0xd0] sm:$0xff] }
 0x182   :  { %v2529_v54 = vadd.f32 %v4619_v18, %v2398_v46 }
 0x184   :  { %v1537_v47 = vpop.f32.mrf.mxu2  ;;  %v2657_v57 = vmax.f32 %v2529_v54, 0.0 }
 0x185   :  { %v1866_v49 = vpop.f32.mrf.mxu3  ;;  %v882_v50 = vpop.f32.mrf.mxu0 }
 0x186   :  { %v2271_v52 = vmax.f32 %v1537_v47, %v1866_v49  ;;  %v1211_v53 = vpop.f32.mrf.mxu1 }
 0x187   :  { %v2144_v0 = vmax.f32 %v882_v50, %v1211_v53 }
 0x188   :  { %v2399_v55 = vmax.f32 %v2143_v51, %v2271_v52  ;;  %3568 = vmatmul.msk.bf16.gmra.mxu0 %vm592_vm1, %v3911_v48 }
 0x189   :  { %3632 = vmatmul.msk.bf16.gmra.mxu1 %vm592_vm1, %v3911_v48  ;;  %3696 = vmatmul.msk.bf16.gmra.mxu2 %vm592_vm1, %v3911_v48 }
 0x18a   :  { %v2530_v56 = vadd.f32 %v4619_v18, %v2399_v55  ;;  %3760 = vmatmul.msk.bf16.gmra.mxu3 %vm592_vm1, %v3911_v48 }
 0x18c   :  { %v2658_v58 = vmax.f32 %v2530_v56, 0.0  ;;  %v1540_v59 = vpop.f32.mrf.mxu2 }
 0x18d   :  { %v1869_v60 = vpop.f32.mrf.mxu3  ;;  %v884_v61 = vpop.f32.mrf.mxu0 }
 0x18e   :  { %v4042_v62 = vpack.c.bf16 %v2658_v58, %v2657_v57  ;;  %v1213_v63 = vpop.f32.mrf.mxu1  ;;  %v2272_v1 = vmax.f32 %v1540_v59, %v1869_v60 }
 0x18f   :  { %v2145_v7 = vmax.f32 %v884_v61, %v1213_v63 }
 0x190   :  { %4302 = vst [vmem:[#allocation2 + $0x70] sm:$0xff] %v4042_v62   ;;  %v2400_v2 = vmax.f32 %v2144_v0, %v2272_v1  ;;  %v3915_v1 = vld [vmem:[%s5196_s0 + $0xd8] sm:$0xff] }
 0x192   :  { %v2531_v10 = vadd.f32 %v4619_v18, %v2400_v2 }
 0x194   :  { %v1542_v3 = vpop.f32.mrf.mxu2  ;;  %v2659_v13 = vmax.f32 %v2531_v10, 0.0 }
 0x195   :  { %v1871_v5 = vpop.f32.mrf.mxu3  ;;  %v887_v6 = vpop.f32.mrf.mxu0 }
 0x196   :  { %v2273_v8 = vmax.f32 %v1542_v3, %v1871_v5  ;;  %v1216_v9 = vpop.f32.mrf.mxu1 }
 0x197   :  { %v2146_v21 = vmax.f32 %v887_v6, %v1216_v9 }
 0x198   :  { %v2401_v11 = vmax.f32 %v2145_v7, %v2273_v8  ;;  %3569 = vmatmul.msk.bf16.gmra.mxu0 %vm592_vm1, %v3912_v4 }
 0x199   :  { %3633 = vmatmul.msk.bf16.gmra.mxu1 %vm592_vm1, %v3912_v4  ;;  %3697 = vmatmul.msk.bf16.gmra.mxu2 %vm592_vm1, %v3912_v4 }
 0x19a   :  { %v2532_v12 = vadd.f32 %v4619_v18, %v2401_v11  ;;  %3761 = vmatmul.msk.bf16.gmra.mxu3 %vm592_vm1, %v3912_v4 }
 0x19c   :  { %v2660_v14 = vmax.f32 %v2532_v12, 0.0  ;;  %v1545_v15 = vpop.f32.mrf.mxu2 }
 0x19d   :  { %v1874_v16 = vpop.f32.mrf.mxu3  ;;  %v889_v17 = vpop.f32.mrf.mxu0 }
 0x19e   :  { %v4047_v19 = vpack.c.bf16 %v2660_v14, %v2659_v13  ;;  %v1218_v20 = vpop.f32.mrf.mxu1  ;;  %v2274_v22 = vmax.f32 %v1545_v15, %v1874_v16 }
 0x19f   :  { %v2147_v28 = vmax.f32 %v889_v17, %v1218_v20 }
 0x1a0   :  { %4303 = vst [vmem:[#allocation2 + $0x78] sm:$0xff] %v4047_v19   ;;  %v2402_v23 = vmax.f32 %v2146_v21, %v2274_v22  ;;  %v3916_v22 = vld [vmem:[%s5196_s0 + $0xe0] sm:$0xff] }
 0x1a2   :  { %v2533_v31 = vadd.f32 %v4619_v18, %v2402_v23 }
 0x1a4   :  { %v1547_v24 = vpop.f32.mrf.mxu2  ;;  %v2661_v34 = vmax.f32 %v2533_v31, 0.0 }
 0x1a5   :  { %v1876_v26 = vpop.f32.mrf.mxu3  ;;  %v892_v27 = vpop.f32.mrf.mxu0 }
 0x1a6   :  { %v2275_v29 = vmax.f32 %v1547_v24, %v1876_v26  ;;  %v1221_v30 = vpop.f32.mrf.mxu1 }
 0x1a7   :  { %v2148_v41 = vmax.f32 %v892_v27, %v1221_v30 }
 0x1a8   :  { %v2403_v32 = vmax.f32 %v2147_v28, %v2275_v29  ;;  %3570 = vmatmul.msk.bf16.gmra.mxu0 %vm592_vm1, %v3913_v25 }
 0x1a9   :  { %3634 = vmatmul.msk.bf16.gmra.mxu1 %vm592_vm1, %v3913_v25  ;;  %3698 = vmatmul.msk.bf16.gmra.mxu2 %vm592_vm1, %v3913_v25 }
 0x1aa   :  { %v2534_v33 = vadd.f32 %v4619_v18, %v2403_v32  ;;  %3762 = vmatmul.msk.bf16.gmra.mxu3 %vm592_vm1, %v3913_v25 }
 0x1ac   :  { %v2662_v35 = vmax.f32 %v2534_v33, 0.0  ;;  %v1550_v36 = vpop.f32.mrf.mxu2 }
 0x1ad   :  { %v1879_v37 = vpop.f32.mrf.mxu3  ;;  %v894_v38 = vpop.f32.mrf.mxu0 }
 0x1ae   :  { %v4052_v39 = vpack.c.bf16 %v2662_v35, %v2661_v34  ;;  %v1223_v40 = vpop.f32.mrf.mxu1  ;;  %v2276_v42 = vmax.f32 %v1550_v36, %v1879_v37 }
 0x1af   :  { %v2149_v48 = vmax.f32 %v894_v38, %v1223_v40 }
 0x1b0   :  { %4304 = vst [vmem:[#allocation2 + $0x80] sm:$0xff] %v4052_v39   ;;  %v2404_v43 = vmax.f32 %v2148_v41, %v2276_v42  ;;  %v3917_v42 = vld [vmem:[%s5196_s0 + $0xe8] sm:$0xff] }
 0x1b2   :  { %v2535_v51 = vadd.f32 %v4619_v18, %v2404_v43 }
 0x1b4   :  { %v1552_v44 = vpop.f32.mrf.mxu2  ;;  %v2663_v54 = vmax.f32 %v2535_v51, 0.0 }
 0x1b5   :  { %v1881_v46 = vpop.f32.mrf.mxu3  ;;  %v897_v47 = vpop.f32.mrf.mxu0 }
 0x1b6   :  { %v2277_v49 = vmax.f32 %v1552_v44, %v1881_v46  ;;  %v1226_v50 = vpop.f32.mrf.mxu1 }
 0x1b7   :  { %v2150_v61 = vmax.f32 %v897_v47, %v1226_v50  ;;  %v4811_v50 = vld [vmem:[%s5197_s2] ss:$0 sm:$0xff] }
 0x1b8   :  { %v2405_v52 = vmax.f32 %v2149_v48, %v2277_v49  ;;  %3571 = vmatmul.msk.bf16.gmra.mxu0 %vm592_vm1, %v3914_v45 }
 0x1b9   :  { %3635 = vmatmul.msk.bf16.gmra.mxu1 %vm592_vm1, %v3914_v45  ;;  %3699 = vmatmul.msk.bf16.gmra.mxu2 %vm592_vm1, %v3914_v45 }
 0x1ba   :  { %v2536_v53 = vadd.f32 %v4619_v18, %v2405_v52  ;;  %3763 = vmatmul.msk.bf16.gmra.mxu3 %vm592_vm1, %v3914_v45 }
 0x1bc   :  { %v2664_v55 = vmax.f32 %v2536_v53, 0.0  ;;  %v1555_v56 = vpop.f32.mrf.mxu2 }
 0x1bd   :  { %v1884_v57 = vpop.f32.mrf.mxu3  ;;  %v899_v58 = vpop.f32.mrf.mxu0 }
 0x1be   :  { %v4057_v59 = vpack.c.bf16 %v2664_v55, %v2663_v54  ;;  %v1228_v60 = vpop.f32.mrf.mxu1  ;;  %v2278_v62 = vmax.f32 %v1555_v56, %v1884_v57 }
 0x1bf   :  { %v2151_v4 = vmax.f32 %v899_v58, %v1228_v60 }
 0x1c0   :  { %4305 = vst [vmem:[#allocation2 + $0x88] sm:$0xff] %v4057_v59   ;;  %v2406_v63 = vmax.f32 %v2150_v61, %v2278_v62  ;;  %v3918_v62 = vld [vmem:[%s5196_s0 + $0xf0] sm:$0xff] }
 0x1c2   :  { %v2537_v7 = vadd.f32 %v4619_v18, %v2406_v63 }
 0x1c4   :  { %v1557_v0 = vpop.f32.mrf.mxu2  ;;  %v2665_v10 = vmax.f32 %v2537_v7, 0.0 }
 0x1c5   :  { %v1886_v2 = vpop.f32.mrf.mxu3  ;;  %v902_v3 = vpop.f32.mrf.mxu0 }
 0x1c6   :  { %v2279_v5 = vmax.f32 %v1557_v0, %v1886_v2  ;;  %v1231_v6 = vpop.f32.mrf.mxu1 }
 0x1c7   :  { %v2152_v17 = vmax.f32 %v902_v3, %v1231_v6 }
 0x1c8   :  { %v2407_v8 = vmax.f32 %v2151_v4, %v2279_v5  ;;  %3572 = vmatmul.msk.bf16.gmra.mxu0 %vm592_vm1, %v3915_v1 }
 0x1c9   :  { %3636 = vmatmul.msk.bf16.gmra.mxu1 %vm592_vm1, %v3915_v1  ;;  %3700 = vmatmul.msk.bf16.gmra.mxu2 %vm592_vm1, %v3915_v1 }
 0x1ca   :  { %v2538_v9 = vadd.f32 %v4619_v18, %v2407_v8  ;;  %3764 = vmatmul.msk.bf16.gmra.mxu3 %vm592_vm1, %v3915_v1 }
 0x1cc   :  { %v2666_v11 = vmax.f32 %v2538_v9, 0.0  ;;  %v1560_v12 = vpop.f32.mrf.mxu2 }
 0x1cd   :  { %v1889_v13 = vpop.f32.mrf.mxu3  ;;  %v904_v14 = vpop.f32.mrf.mxu0 }
 0x1ce   :  { %v4062_v15 = vpack.c.bf16 %v2666_v11, %v2665_v10  ;;  %v1233_v16 = vpop.f32.mrf.mxu1  ;;  %v2280_v19 = vmax.f32 %v1560_v12, %v1889_v13 }
 0x1cf   :  { %v2153_v25 = vmax.f32 %v904_v14, %v1233_v16 }
 0x1d0   :  { %4306 = vst [vmem:[#allocation2 + $0x90] sm:$0xff] %v4062_v15   ;;  %v2408_v20 = vmax.f32 %v2152_v17, %v2280_v19  ;;  %v3919_v19 = vld [vmem:[%s5196_s0 + $0xf8] sm:$0xff] }
 0x1d2   :  { %v2539_v28 = vadd.f32 %v4619_v18, %v2408_v20 }
 0x1d4   :  { %v1562_v21 = vpop.f32.mrf.mxu2  ;;  %v2667_v31 = vmax.f32 %v2539_v28, 0.0 }
 0x1d5   :  { %v1891_v23 = vpop.f32.mrf.mxu3  ;;  %v907_v24 = vpop.f32.mrf.mxu0 }
 0x1d6   :  { %v2281_v26 = vmax.f32 %v1562_v21, %v1891_v23  ;;  %v1236_v27 = vpop.f32.mrf.mxu1 }
 0x1d7   :  { %v2154_v38 = vmax.f32 %v907_v24, %v1236_v27 }
 0x1d8   :  { %v2409_v29 = vmax.f32 %v2153_v25, %v2281_v26  ;;  %3573 = vmatmul.msk.bf16.gmra.mxu0 %vm592_vm1, %v3916_v22 }
 0x1d9   :  { %3637 = vmatmul.msk.bf16.gmra.mxu1 %vm592_vm1, %v3916_v22  ;;  %3701 = vmatmul.msk.bf16.gmra.mxu2 %vm592_vm1, %v3916_v22 }
 0x1da   :  { %v2540_v30 = vadd.f32 %v4619_v18, %v2409_v29  ;;  %3765 = vmatmul.msk.bf16.gmra.mxu3 %vm592_vm1, %v3916_v22 }
 0x1dc   :  { %v2668_v32 = vmax.f32 %v2540_v30, 0.0  ;;  %v1565_v33 = vpop.f32.mrf.mxu2 }
 0x1dd   :  { %v1894_v34 = vpop.f32.mrf.mxu3  ;;  %v909_v35 = vpop.f32.mrf.mxu0 }
 0x1de   :  { %v4067_v36 = vpack.c.bf16 %v2668_v32, %v2667_v31  ;;  %v1238_v37 = vpop.f32.mrf.mxu1  ;;  %v2282_v39 = vmax.f32 %v1565_v33, %v1894_v34 }
 0x1df   :  { %v2155_v45 = vmax.f32 %v909_v35, %v1238_v37 }
 0x1e0   :  { %4307 = vst [vmem:[#allocation2 + $0x98] sm:$0xff] %v4067_v36   ;;  %v2410_v40 = vmax.f32 %v2154_v38, %v2282_v39  ;;  %v3920_v39 = vld [vmem:[%s5196_s0 + $0x100] sm:$0xff] }
 0x1e2   :  { %v2541_v48 = vadd.f32 %v4619_v18, %v2410_v40 }
 0x1e4   :  { %v1567_v41 = vpop.f32.mrf.mxu2  ;;  %v2669_v52 = vmax.f32 %v2541_v48, 0.0 }
 0x1e5   :  { %v1896_v43 = vpop.f32.mrf.mxu3  ;;  %v912_v44 = vpop.f32.mrf.mxu0 }
 0x1e6   :  { %v2283_v46 = vmax.f32 %v1567_v41, %v1896_v43  ;;  %v1241_v47 = vpop.f32.mrf.mxu1 }
 0x1e7   :  { %v2156_v58 = vmax.f32 %v912_v44, %v1241_v47 }
 0x1e8   :  { %v2411_v49 = vmax.f32 %v2155_v45, %v2283_v46  ;;  %3574 = vmatmul.msk.bf16.gmra.mxu0 %vm592_vm1, %v3917_v42 }
 0x1e9   :  { %3638 = vmatmul.msk.bf16.gmra.mxu1 %vm592_vm1, %v3917_v42  ;;  %3702 = vmatmul.msk.bf16.gmra.mxu2 %vm592_vm1, %v3917_v42 }
 0x1ea   :  { %v2542_v51 = vadd.f32 %v4811_v50, %v2411_v49  ;;  %3766 = vmatmul.msk.bf16.gmra.mxu3 %vm592_vm1, %v3917_v42 }
 0x1ec   :  { %v2670_v53 = vmax.f32 %v2542_v51, 0.0  ;;  %v1570_v54 = vpop.f32.mrf.mxu2 }
 0x1ed   :  { %v1899_v18 = vpop.f32.mrf.mxu3  ;;  %v914_v55 = vpop.f32.mrf.mxu0 }
 0x1ee   :  { %v4072_v56 = vpack.c.bf16 %v2670_v53, %v2669_v52  ;;  %v1243_v57 = vpop.f32.mrf.mxu1  ;;  %v2284_v59 = vmax.f32 %v1570_v54, %v1899_v18 }
 0x1ef   :  { %v2157_v1 = vmax.f32 %v914_v55, %v1243_v57 }
 0x1f0   :  { %4308 = vst [vmem:[#allocation2 + $0xa0] sm:$0xff] %v4072_v56   ;;  %v2412_v60 = vmax.f32 %v2156_v58, %v2284_v59  ;;  %v3921_v59 = vld [vmem:[%s5196_s0 + $0x108] sm:$0xff] }
 0x1f2   :  { %v2543_v4 = vadd.f32 %v4811_v50, %v2412_v60 }
 0x1f4   :  { %v1572_v61 = vpop.f32.mrf.mxu2  ;;  %v2671_v7 = vmax.f32 %v2543_v4, 0.0 }
 0x1f5   :  { %v1901_v63 = vpop.f32.mrf.mxu3  ;;  %v917_v0 = vpop.f32.mrf.mxu0 }
 0x1f6   :  { %v2285_v2 = vmax.f32 %v1572_v61, %v1901_v63  ;;  %v1246_v3 = vpop.f32.mrf.mxu1 }
 0x1f7   :  { %v2158_v14 = vmax.f32 %v917_v0, %v1246_v3 }
 0x1f8   :  { %v2413_v5 = vmax.f32 %v2157_v1, %v2285_v2  ;;  %3575 = vmatmul.msk.bf16.gmra.mxu0 %vm592_vm1, %v3918_v62 }
 0x1f9   :  { %3639 = vmatmul.msk.bf16.gmra.mxu1 %vm592_vm1, %v3918_v62  ;;  %3703 = vmatmul.msk.bf16.gmra.mxu2 %vm592_vm1, %v3918_v62 }
 0x1fa   :  { %v2544_v6 = vadd.f32 %v4811_v50, %v2413_v5  ;;  %3767 = vmatmul.msk.bf16.gmra.mxu3 %vm592_vm1, %v3918_v62 }
 0x1fc   :  { %v2672_v8 = vmax.f32 %v2544_v6, 0.0  ;;  %v1575_v9 = vpop.f32.mrf.mxu2 }
 0x1fd   :  { %v1904_v10 = vpop.f32.mrf.mxu3  ;;  %v919_v11 = vpop.f32.mrf.mxu0 }
 0x1fe   :  { %v4077_v12 = vpack.c.bf16 %v2672_v8, %v2671_v7  ;;  %v1248_v13 = vpop.f32.mrf.mxu1  ;;  %v2286_v15 = vmax.f32 %v1575_v9, %v1904_v10 }
 0x1ff   :  { %v2159_v22 = vmax.f32 %v919_v11, %v1248_v13 }
 0x200   :  { %4309 = vst [vmem:[#allocation2 + $0xa8] sm:$0xff] %v4077_v12   ;;  %v2414_v16 = vmax.f32 %v2158_v14, %v2286_v15  ;;  %v3922_v15 = vld [vmem:[%s5196_s0 + $0x110] sm:$0xff] }
 0x202   :  { %v2545_v25 = vadd.f32 %v4811_v50, %v2414_v16 }
 0x204   :  { %v1577_v17 = vpop.f32.mrf.mxu2  ;;  %v2673_v28 = vmax.f32 %v2545_v25, 0.0 }
 0x205   :  { %v1906_v20 = vpop.f32.mrf.mxu3  ;;  %v922_v21 = vpop.f32.mrf.mxu0 }
 0x206   :  { %v2287_v23 = vmax.f32 %v1577_v17, %v1906_v20  ;;  %v1251_v24 = vpop.f32.mrf.mxu1 }
 0x207   :  { %v2160_v35 = vmax.f32 %v922_v21, %v1251_v24 }
 0x208   :  { %v2415_v26 = vmax.f32 %v2159_v22, %v2287_v23  ;;  %3576 = vmatmul.msk.bf16.gmra.mxu0 %vm592_vm1, %v3919_v19 }
 0x209   :  { %3640 = vmatmul.msk.bf16.gmra.mxu1 %vm592_vm1, %v3919_v19  ;;  %3704 = vmatmul.msk.bf16.gmra.mxu2 %vm592_vm1, %v3919_v19 }
 0x20a   :  { %v2546_v27 = vadd.f32 %v4811_v50, %v2415_v26  ;;  %3768 = vmatmul.msk.bf16.gmra.mxu3 %vm592_vm1, %v3919_v19 }
 0x20c   :  { %v2674_v29 = vmax.f32 %v2546_v27, 0.0  ;;  %v1580_v30 = vpop.f32.mrf.mxu2 }
 0x20d   :  { %v1909_v31 = vpop.f32.mrf.mxu3  ;;  %v924_v32 = vpop.f32.mrf.mxu0 }
 0x20e   :  { %v4082_v33 = vpack.c.bf16 %v2674_v29, %v2673_v28  ;;  %v1253_v34 = vpop.f32.mrf.mxu1  ;;  %v2288_v36 = vmax.f32 %v1580_v30, %v1909_v31 }
 0x20f   :  { %v2161_v42 = vmax.f32 %v924_v32, %v1253_v34 }
 0x210   :  { %4310 = vst [vmem:[#allocation2 + $0xb0] sm:$0xff] %v4082_v33   ;;  %v2416_v37 = vmax.f32 %v2160_v35, %v2288_v36  ;;  %v3923_v36 = vld [vmem:[%s5196_s0 + $0x118] sm:$0xff] }
 0x212   :  { %v2547_v45 = vadd.f32 %v4811_v50, %v2416_v37 }
 0x214   :  { %v1582_v38 = vpop.f32.mrf.mxu2  ;;  %v2675_v48 = vmax.f32 %v2547_v45, 0.0 }
 0x215   :  { %v1911_v40 = vpop.f32.mrf.mxu3  ;;  %v927_v41 = vpop.f32.mrf.mxu0 }
 0x216   :  { %v2289_v43 = vmax.f32 %v1582_v38, %v1911_v40  ;;  %v1256_v44 = vpop.f32.mrf.mxu1 }
 0x217   :  { %v2162_v55 = vmax.f32 %v927_v41, %v1256_v44 }
 0x218   :  { %v2417_v46 = vmax.f32 %v2161_v42, %v2289_v43  ;;  %3577 = vmatmul.msk.bf16.gmra.mxu0 %vm592_vm1, %v3920_v39 }
 0x219   :  { %3641 = vmatmul.msk.bf16.gmra.mxu1 %vm592_vm1, %v3920_v39  ;;  %3705 = vmatmul.msk.bf16.gmra.mxu2 %vm592_vm1, %v3920_v39 }
 0x21a   :  { %v2548_v47 = vadd.f32 %v4811_v50, %v2417_v46  ;;  %3769 = vmatmul.msk.bf16.gmra.mxu3 %vm592_vm1, %v3920_v39 }
 0x21c   :  { %v2676_v49 = vmax.f32 %v2548_v47, 0.0  ;;  %v1585_v51 = vpop.f32.mrf.mxu2 }
 0x21d   :  { %v1914_v52 = vpop.f32.mrf.mxu3  ;;  %v929_v53 = vpop.f32.mrf.mxu0 }
 0x21e   :  { %v4087_v54 = vpack.c.bf16 %v2676_v49, %v2675_v48  ;;  %v1258_v18 = vpop.f32.mrf.mxu1  ;;  %v2290_v56 = vmax.f32 %v1585_v51, %v1914_v52 }
 0x21f   :  { %v2163_v62 = vmax.f32 %v929_v53, %v1258_v18 }
 0x220   :  { %4311 = vst [vmem:[#allocation2 + $0xb8] sm:$0xff] %v4087_v54   ;;  %v2418_v57 = vmax.f32 %v2162_v55, %v2290_v56  ;;  %v3924_v56 = vld [vmem:[%s5196_s0 + $0x120] sm:$0xff] }
 0x222   :  { %v2549_v1 = vadd.f32 %v4811_v50, %v2418_v57 }
 0x224   :  { %v1587_v58 = vpop.f32.mrf.mxu2  ;;  %v2677_v4 = vmax.f32 %v2549_v1, 0.0 }
 0x225   :  { %v1916_v60 = vpop.f32.mrf.mxu3  ;;  %v932_v61 = vpop.f32.mrf.mxu0 }
 0x226   :  { %v2291_v63 = vmax.f32 %v1587_v58, %v1916_v60  ;;  %v1261_v0 = vpop.f32.mrf.mxu1 }
 0x227   :  { %v2164_v11 = vmax.f32 %v932_v61, %v1261_v0 }
 0x228   :  { %v2419_v2 = vmax.f32 %v2163_v62, %v2291_v63  ;;  %3578 = vmatmul.msk.bf16.gmra.mxu0 %vm592_vm1, %v3921_v59 }
 0x229   :  { %3642 = vmatmul.msk.bf16.gmra.mxu1 %vm592_vm1, %v3921_v59  ;;  %3706 = vmatmul.msk.bf16.gmra.mxu2 %vm592_vm1, %v3921_v59 }
 0x22a   :  { %v2550_v3 = vadd.f32 %v4811_v50, %v2419_v2  ;;  %3770 = vmatmul.msk.bf16.gmra.mxu3 %vm592_vm1, %v3921_v59 }
 0x22c   :  { %v2678_v5 = vmax.f32 %v2550_v3, 0.0  ;;  %v1590_v6 = vpop.f32.mrf.mxu2 }
 0x22d   :  { %v1919_v7 = vpop.f32.mrf.mxu3  ;;  %v934_v8 = vpop.f32.mrf.mxu0 }
 0x22e   :  { %v4092_v9 = vpack.c.bf16 %v2678_v5, %v2677_v4  ;;  %v1263_v10 = vpop.f32.mrf.mxu1  ;;  %v2292_v12 = vmax.f32 %v1590_v6, %v1919_v7 }
 0x22f   :  { %v2165_v19 = vmax.f32 %v934_v8, %v1263_v10 }
 0x230   :  { %4312 = vst [vmem:[#allocation2 + $0xc0] sm:$0xff] %v4092_v9   ;;  %v2420_v13 = vmax.f32 %v2164_v11, %v2292_v12  ;;  %v3925_v12 = vld [vmem:[%s5196_s0 + $0x128] sm:$0xff] }
 0x232   :  { %v2551_v22 = vadd.f32 %v4811_v50, %v2420_v13 }
 0x234   :  { %v1592_v14 = vpop.f32.mrf.mxu2  ;;  %v2679_v25 = vmax.f32 %v2551_v22, 0.0 }
 0x235   :  { %v1921_v16 = vpop.f32.mrf.mxu3  ;;  %v937_v17 = vpop.f32.mrf.mxu0 }
 0x236   :  { %v2293_v20 = vmax.f32 %v1592_v14, %v1921_v16  ;;  %v1266_v21 = vpop.f32.mrf.mxu1 }
 0x237   :  { %v2166_v32 = vmax.f32 %v937_v17, %v1266_v21 }
 0x238   :  { %v2421_v23 = vmax.f32 %v2165_v19, %v2293_v20  ;;  %3579 = vmatmul.msk.bf16.gmra.mxu0 %vm592_vm1, %v3922_v15 }
 0x239   :  { %3643 = vmatmul.msk.bf16.gmra.mxu1 %vm592_vm1, %v3922_v15  ;;  %3707 = vmatmul.msk.bf16.gmra.mxu2 %vm592_vm1, %v3922_v15 }
 0x23a   :  { %v2552_v24 = vadd.f32 %v4811_v50, %v2421_v23  ;;  %3771 = vmatmul.msk.bf16.gmra.mxu3 %vm592_vm1, %v3922_v15 }
 0x23c   :  { %v2680_v26 = vmax.f32 %v2552_v24, 0.0  ;;  %v1595_v27 = vpop.f32.mrf.mxu2 }
 0x23d   :  { %v1924_v28 = vpop.f32.mrf.mxu3  ;;  %v939_v29 = vpop.f32.mrf.mxu0 }
 0x23e   :  { %v4097_v30 = vpack.c.bf16 %v2680_v26, %v2679_v25  ;;  %v1268_v31 = vpop.f32.mrf.mxu1  ;;  %v2294_v33 = vmax.f32 %v1595_v27, %v1924_v28 }
 0x23f   :  { %v2167_v39 = vmax.f32 %v939_v29, %v1268_v31 }
 0x240   :  { %4313 = vst [vmem:[#allocation2 + $0xc8] sm:$0xff] %v4097_v30   ;;  %v2422_v34 = vmax.f32 %v2166_v32, %v2294_v33  ;;  %v3926_v33 = vld [vmem:[%s5196_s0 + $0x130] sm:$0xff] }
 0x242   :  { %v2553_v42 = vadd.f32 %v4811_v50, %v2422_v34 }
 0x244   :  { %v1597_v35 = vpop.f32.mrf.mxu2  ;;  %v2681_v45 = vmax.f32 %v2553_v42, 0.0 }
 0x245   :  { %v1926_v37 = vpop.f32.mrf.mxu3  ;;  %v942_v38 = vpop.f32.mrf.mxu0 }
 0x246   :  { %v2295_v40 = vmax.f32 %v1597_v35, %v1926_v37  ;;  %v1271_v41 = vpop.f32.mrf.mxu1 }
 0x247   :  { %v2168_v53 = vmax.f32 %v942_v38, %v1271_v41 }
 0x248   :  { %v2423_v43 = vmax.f32 %v2167_v39, %v2295_v40  ;;  %3580 = vmatmul.msk.bf16.gmra.mxu0 %vm592_vm1, %v3923_v36 }
 0x249   :  { %3644 = vmatmul.msk.bf16.gmra.mxu1 %vm592_vm1, %v3923_v36  ;;  %3708 = vmatmul.msk.bf16.gmra.mxu2 %vm592_vm1, %v3923_v36 }
 0x24a   :  { %v2554_v44 = vadd.f32 %v4811_v50, %v2423_v43  ;;  %3772 = vmatmul.msk.bf16.gmra.mxu3 %vm592_vm1, %v3923_v36 }
 0x24c   :  { %v2682_v46 = vmax.f32 %v2554_v44, 0.0  ;;  %v1600_v47 = vpop.f32.mrf.mxu2 }
 0x24d   :  { %v1929_v48 = vpop.f32.mrf.mxu3  ;;  %v944_v49 = vpop.f32.mrf.mxu0 }
 0x24e   :  { %v4102_v51 = vpack.c.bf16 %v2682_v46, %v2681_v45  ;;  %v1273_v52 = vpop.f32.mrf.mxu1  ;;  %v2296_v54 = vmax.f32 %v1600_v47, %v1929_v48 }
 0x24f   :  { %v2169_v59 = vmax.f32 %v944_v49, %v1273_v52 }
 0x250   :  { %4314 = vst [vmem:[#allocation2 + $0xd0] sm:$0xff] %v4102_v51   ;;  %v2424_v18 = vmax.f32 %v2168_v53, %v2296_v54  ;;  %v3927_v54 = vld [vmem:[%s5196_s0 + $0x138] sm:$0xff] }
 0x252   :  { %v2555_v62 = vadd.f32 %v4811_v50, %v2424_v18 }
 0x254   :  { %v1602_v55 = vpop.f32.mrf.mxu2  ;;  %v2683_v1 = vmax.f32 %v2555_v62, 0.0 }
 0x255   :  { %v1931_v57 = vpop.f32.mrf.mxu3  ;;  %v947_v58 = vpop.f32.mrf.mxu0 }
 0x256   :  { %v2297_v60 = vmax.f32 %v1602_v55, %v1931_v57  ;;  %v1276_v61 = vpop.f32.mrf.mxu1 }
 0x257   :  { %v2170_v8 = vmax.f32 %v947_v58, %v1276_v61 }
 0x258   :  { %v2425_v63 = vmax.f32 %v2169_v59, %v2297_v60  ;;  %3581 = vmatmul.msk.bf16.gmra.mxu0 %vm592_vm1, %v3924_v56 }
 0x259   :  { %3645 = vmatmul.msk.bf16.gmra.mxu1 %vm592_vm1, %v3924_v56  ;;  %3709 = vmatmul.msk.bf16.gmra.mxu2 %vm592_vm1, %v3924_v56 }
 0x25a   :  { %v2556_v0 = vadd.f32 %v4811_v50, %v2425_v63  ;;  %3773 = vmatmul.msk.bf16.gmra.mxu3 %vm592_vm1, %v3924_v56 }
 0x25c   :  { %v2684_v2 = vmax.f32 %v2556_v0, 0.0  ;;  %v1605_v3 = vpop.f32.mrf.mxu2 }
 0x25d   :  { %v1934_v4 = vpop.f32.mrf.mxu3  ;;  %v949_v5 = vpop.f32.mrf.mxu0 }
 0x25e   :  { %v4107_v6 = vpack.c.bf16 %v2684_v2, %v2683_v1  ;;  %v1278_v7 = vpop.f32.mrf.mxu1  ;;  %v2298_v9 = vmax.f32 %v1605_v3, %v1934_v4 }
 0x25f   :  { %v2171_v15 = vmax.f32 %v949_v5, %v1278_v7 }
 0x260   :  { %4315 = vst [vmem:[#allocation2 + $0xd8] sm:$0xff] %v4107_v6   ;;  %v2426_v10 = vmax.f32 %v2170_v8, %v2298_v9  ;;  %v3928_v9 = vld [vmem:[%s5196_s0 + $0x140] sm:$0xff] }
 0x262   :  { %v2557_v19 = vadd.f32 %v4811_v50, %v2426_v10 }
 0x264   :  { %v1607_v11 = vpop.f32.mrf.mxu2  ;;  %v2685_v22 = vmax.f32 %v2557_v19, 0.0 }
 0x265   :  { %v1936_v13 = vpop.f32.mrf.mxu3  ;;  %v952_v14 = vpop.f32.mrf.mxu0 }
 0x266   :  { %v2299_v16 = vmax.f32 %v1607_v11, %v1936_v13  ;;  %v1281_v17 = vpop.f32.mrf.mxu1 }
 0x267   :  { %v2172_v29 = vmax.f32 %v952_v14, %v1281_v17 }
 0x268   :  { %v2427_v20 = vmax.f32 %v2171_v15, %v2299_v16  ;;  %3582 = vmatmul.msk.bf16.gmra.mxu0 %vm592_vm1, %v3925_v12 }
 0x269   :  { %3646 = vmatmul.msk.bf16.gmra.mxu1 %vm592_vm1, %v3925_v12  ;;  %3710 = vmatmul.msk.bf16.gmra.mxu2 %vm592_vm1, %v3925_v12 }
 0x26a   :  { %v2558_v21 = vadd.f32 %v4811_v50, %v2427_v20  ;;  %3774 = vmatmul.msk.bf16.gmra.mxu3 %vm592_vm1, %v3925_v12 }
 0x26c   :  { %v2686_v23 = vmax.f32 %v2558_v21, 0.0  ;;  %v1610_v24 = vpop.f32.mrf.mxu2 }
 0x26d   :  { %v1939_v25 = vpop.f32.mrf.mxu3  ;;  %v954_v26 = vpop.f32.mrf.mxu0 }
 0x26e   :  { %v4112_v27 = vpack.c.bf16 %v2686_v23, %v2685_v22  ;;  %v1283_v28 = vpop.f32.mrf.mxu1  ;;  %v2300_v30 = vmax.f32 %v1610_v24, %v1939_v25 }
 0x26f   :  { %v2173_v36 = vmax.f32 %v954_v26, %v1283_v28 }
 0x270   :  { %4316 = vst [vmem:[#allocation2 + $0xe0] sm:$0xff] %v4112_v27   ;;  %v2428_v31 = vmax.f32 %v2172_v29, %v2300_v30  ;;  %v3929_v30 = vld [vmem:[%s5196_s0 + $0x148] sm:$0xff] }
 0x272   :  { %v2559_v39 = vadd.f32 %v4811_v50, %v2428_v31 }
 0x274   :  { %v1612_v32 = vpop.f32.mrf.mxu2  ;;  %v2687_v42 = vmax.f32 %v2559_v39, 0.0 }
 0x275   :  { %v1941_v34 = vpop.f32.mrf.mxu3  ;;  %v957_v35 = vpop.f32.mrf.mxu0 }
 0x276   :  { %v2301_v37 = vmax.f32 %v1612_v32, %v1941_v34  ;;  %v1286_v38 = vpop.f32.mrf.mxu1 }
 0x277   :  { %v2174_v49 = vmax.f32 %v957_v35, %v1286_v38 }
 0x278   :  { %v2429_v40 = vmax.f32 %v2173_v36, %v2301_v37  ;;  %3583 = vmatmul.msk.bf16.gmra.mxu0 %vm592_vm1, %v3926_v33 }
 0x279   :  { %3647 = vmatmul.msk.bf16.gmra.mxu1 %vm592_vm1, %v3926_v33  ;;  %3711 = vmatmul.msk.bf16.gmra.mxu2 %vm592_vm1, %v3926_v33 }
 0x27a   :  { %v2560_v41 = vadd.f32 %v4811_v50, %v2429_v40  ;;  %3775 = vmatmul.msk.bf16.gmra.mxu3 %vm592_vm1, %v3926_v33 }
 0x27c   :  { %v2688_v43 = vmax.f32 %v2560_v41, 0.0  ;;  %v1615_v44 = vpop.f32.mrf.mxu2 }
 0x27d   :  { %v1944_v45 = vpop.f32.mrf.mxu3  ;;  %v959_v46 = vpop.f32.mrf.mxu0 }
 0x27e   :  { %v4117_v47 = vpack.c.bf16 %v2688_v43, %v2687_v42  ;;  %v1288_v48 = vpop.f32.mrf.mxu1  ;;  %v2302_v51 = vmax.f32 %v1615_v44, %v1944_v45 }
 0x27f   :  { %v2175_v56 = vmax.f32 %v959_v46, %v1288_v48 }
 0x280   :  { %4317 = vst [vmem:[#allocation2 + $0xe8] sm:$0xff] %v4117_v47   ;;  %v2430_v52 = vmax.f32 %v2174_v49, %v2302_v51  ;;  %v3930_v51 = vld [vmem:[%s5196_s0 + $0x150] sm:$0xff] }
 0x282   :  { %v2561_v59 = vadd.f32 %v4811_v50, %v2430_v52 }
 0x284   :  { %v1617_v53 = vpop.f32.mrf.mxu2  ;;  %v2689_v62 = vmax.f32 %v2561_v59, 0.0 }
 0x285   :  { %v1946_v18 = vpop.f32.mrf.mxu3  ;;  %v962_v55 = vpop.f32.mrf.mxu0 }
 0x286   :  { %v2303_v57 = vmax.f32 %v1617_v53, %v1946_v18  ;;  %v1291_v58 = vpop.f32.mrf.mxu1 }
 0x287   :  { %v2176_v5 = vmax.f32 %v962_v55, %v1291_v58 }
 0x288   :  { %v2431_v60 = vmax.f32 %v2175_v56, %v2303_v57  ;;  %3584 = vmatmul.msk.bf16.gmra.mxu0 %vm592_vm1, %v3927_v54 }
 0x289   :  { %3648 = vmatmul.msk.bf16.gmra.mxu1 %vm592_vm1, %v3927_v54  ;;  %3712 = vmatmul.msk.bf16.gmra.mxu2 %vm592_vm1, %v3927_v54 }
 0x28a   :  { %v2562_v61 = vadd.f32 %v4811_v50, %v2431_v60  ;;  %3776 = vmatmul.msk.bf16.gmra.mxu3 %vm592_vm1, %v3927_v54 }
 0x28c   :  { %v2690_v63 = vmax.f32 %v2562_v61, 0.0  ;;  %v1620_v0 = vpop.f32.mrf.mxu2 }
 0x28d   :  { %v1949_v1 = vpop.f32.mrf.mxu3  ;;  %v964_v2 = vpop.f32.mrf.mxu0 }
 0x28e   :  { %v4122_v3 = vpack.c.bf16 %v2690_v63, %v2689_v62  ;;  %v1293_v4 = vpop.f32.mrf.mxu1  ;;  %v2304_v6 = vmax.f32 %v1620_v0, %v1949_v1 }
 0x28f   :  { %v2177_v12 = vmax.f32 %v964_v2, %v1293_v4 }
 0x290   :  { %4318 = vst [vmem:[#allocation2 + $0xf0] sm:$0xff] %v4122_v3   ;;  %v2432_v7 = vmax.f32 %v2176_v5, %v2304_v6  ;;  %v3931_v6 = vld [vmem:[%s5196_s0 + $0x158] sm:$0xff] }
 0x292   :  { %v2563_v15 = vadd.f32 %v4811_v50, %v2432_v7 }
 0x294   :  { %v1622_v8 = vpop.f32.mrf.mxu2  ;;  %v2691_v19 = vmax.f32 %v2563_v15, 0.0 }
 0x295   :  { %v1951_v10 = vpop.f32.mrf.mxu3  ;;  %v967_v11 = vpop.f32.mrf.mxu0 }
 0x296   :  { %v2305_v13 = vmax.f32 %v1622_v8, %v1951_v10  ;;  %v1296_v14 = vpop.f32.mrf.mxu1 }
 0x297   :  { %v2178_v26 = vmax.f32 %v967_v11, %v1296_v14 }
 0x298   :  { %v2433_v16 = vmax.f32 %v2177_v12, %v2305_v13  ;;  %3585 = vmatmul.msk.bf16.gmra.mxu0 %vm592_vm1, %v3928_v9 }
 0x299   :  { %3649 = vmatmul.msk.bf16.gmra.mxu1 %vm592_vm1, %v3928_v9  ;;  %3713 = vmatmul.msk.bf16.gmra.mxu2 %vm592_vm1, %v3928_v9 }
 0x29a   :  { %v2564_v17 = vadd.f32 %v4811_v50, %v2433_v16  ;;  %3777 = vmatmul.msk.bf16.gmra.mxu3 %vm592_vm1, %v3928_v9 }
 0x29c   :  { %v2692_v20 = vmax.f32 %v2564_v17, 0.0  ;;  %v1625_v21 = vpop.f32.mrf.mxu2 }
 0x29d   :  { %v1954_v22 = vpop.f32.mrf.mxu3  ;;  %v969_v23 = vpop.f32.mrf.mxu0 }
 0x29e   :  { %v4127_v24 = vpack.c.bf16 %v2692_v20, %v2691_v19  ;;  %v1298_v25 = vpop.f32.mrf.mxu1  ;;  %v2306_v27 = vmax.f32 %v1625_v21, %v1954_v22 }
 0x29f   :  { %v2179_v33 = vmax.f32 %v969_v23, %v1298_v25 }
 0x2a0   :  { %4319 = vst [vmem:[#allocation2 + $0xf8] sm:$0xff] %v4127_v24   ;;  %v2434_v28 = vmax.f32 %v2178_v26, %v2306_v27  ;;  %v3932_v27 = vld [vmem:[%s5196_s0 + $0x160] sm:$0xff] }
 0x2a2   :  { %v2565_v36 = vadd.f32 %v4811_v50, %v2434_v28 }
 0x2a4   :  { %v1627_v29 = vpop.f32.mrf.mxu2  ;;  %v2693_v39 = vmax.f32 %v2565_v36, 0.0 }
 0x2a5   :  { %v1956_v31 = vpop.f32.mrf.mxu3  ;;  %v972_v32 = vpop.f32.mrf.mxu0 }
 0x2a6   :  { %v2307_v34 = vmax.f32 %v1627_v29, %v1956_v31  ;;  %v1301_v35 = vpop.f32.mrf.mxu1 }
 0x2a7   :  { %v2180_v46 = vmax.f32 %v972_v32, %v1301_v35 }
 0x2a8   :  { %v2435_v37 = vmax.f32 %v2179_v33, %v2307_v34  ;;  %3586 = vmatmul.msk.bf16.gmra.mxu0 %vm592_vm1, %v3929_v30 }
 0x2a9   :  { %3650 = vmatmul.msk.bf16.gmra.mxu1 %vm592_vm1, %v3929_v30  ;;  %3714 = vmatmul.msk.bf16.gmra.mxu2 %vm592_vm1, %v3929_v30 }
 0x2aa   :  { %v2566_v38 = vadd.f32 %v4811_v50, %v2435_v37  ;;  %3778 = vmatmul.msk.bf16.gmra.mxu3 %vm592_vm1, %v3929_v30 }
 0x2ac   :  { %v2694_v40 = vmax.f32 %v2566_v38, 0.0  ;;  %v1630_v41 = vpop.f32.mrf.mxu2 }
 0x2ad   :  { %v1959_v42 = vpop.f32.mrf.mxu3  ;;  %v974_v43 = vpop.f32.mrf.mxu0 }
 0x2ae   :  { %v4132_v44 = vpack.c.bf16 %v2694_v40, %v2693_v39  ;;  %v1303_v45 = vpop.f32.mrf.mxu1  ;;  %v2308_v47 = vmax.f32 %v1630_v41, %v1959_v42 }
 0x2af   :  { %v2181_v54 = vmax.f32 %v974_v43, %v1303_v45 }
 0x2b0   :  { %4320 = vst [vmem:[#allocation2 + $0x100] sm:$0xff] %v4132_v44   ;;  %v2436_v48 = vmax.f32 %v2180_v46, %v2308_v47  ;;  %v3933_v47 = vld [vmem:[%s5196_s0 + $0x168] sm:$0xff] }
 0x2b2   :  { %v2567_v56 = vadd.f32 %v4811_v50, %v2436_v48 }
 0x2b4   :  { %v1632_v49 = vpop.f32.mrf.mxu2  ;;  %v2695_v59 = vmax.f32 %v2567_v56, 0.0 }
 0x2b5   :  { %v1961_v52 = vpop.f32.mrf.mxu3  ;;  %v977_v53 = vpop.f32.mrf.mxu0 }
 0x2b6   :  { %v2309_v18 = vmax.f32 %v1632_v49, %v1961_v52  ;;  %v1306_v55 = vpop.f32.mrf.mxu1 }
 0x2b7   :  { %v2182_v2 = vmax.f32 %v977_v53, %v1306_v55 }
 0x2b8   :  { %v2437_v57 = vmax.f32 %v2181_v54, %v2309_v18  ;;  %3587 = vmatmul.msk.bf16.gmra.mxu0 %vm592_vm1, %v3930_v51 }
 0x2b9   :  { %3651 = vmatmul.msk.bf16.gmra.mxu1 %vm592_vm1, %v3930_v51  ;;  %3715 = vmatmul.msk.bf16.gmra.mxu2 %vm592_vm1, %v3930_v51 }
 0x2ba   :  { %v2568_v58 = vadd.f32 %v4811_v50, %v2437_v57  ;;  %3779 = vmatmul.msk.bf16.gmra.mxu3 %vm592_vm1, %v3930_v51 }
 0x2bc   :  { %v2696_v60 = vmax.f32 %v2568_v58, 0.0  ;;  %v1635_v61 = vpop.f32.mrf.mxu2 }
 0x2bd   :  { %v1964_v62 = vpop.f32.mrf.mxu3  ;;  %v979_v63 = vpop.f32.mrf.mxu0 }
 0x2be   :  { %v4137_v0 = vpack.c.bf16 %v2696_v60, %v2695_v59  ;;  %v1308_v1 = vpop.f32.mrf.mxu1  ;;  %v2310_v3 = vmax.f32 %v1635_v61, %v1964_v62 }
 0x2bf   :  { %v2183_v9 = vmax.f32 %v979_v63, %v1308_v1 }
 0x2c0   :  { %4321 = vst [vmem:[#allocation2 + $0x108] sm:$0xff] %v4137_v0   ;;  %v2438_v4 = vmax.f32 %v2182_v2, %v2310_v3  ;;  %v3934_v3 = vld [vmem:[%s5196_s0 + $0x170] sm:$0xff] }
 0x2c2   :  { %v2569_v12 = vadd.f32 %v4811_v50, %v2438_v4 }
 0x2c4   :  { %v1637_v5 = vpop.f32.mrf.mxu2  ;;  %v2697_v15 = vmax.f32 %v2569_v12, 0.0 }
 0x2c5   :  { %v1966_v7 = vpop.f32.mrf.mxu3  ;;  %v982_v8 = vpop.f32.mrf.mxu0 }
 0x2c6   :  { %v2311_v10 = vmax.f32 %v1637_v5, %v1966_v7  ;;  %v1311_v11 = vpop.f32.mrf.mxu1 }
 0x2c7   :  { %v2184_v23 = vmax.f32 %v982_v8, %v1311_v11 }
 0x2c8   :  { %v2439_v13 = vmax.f32 %v2183_v9, %v2311_v10  ;;  %3588 = vmatmul.msk.bf16.gmra.mxu0 %vm592_vm1, %v3931_v6 }
 0x2c9   :  { %3652 = vmatmul.msk.bf16.gmra.mxu1 %vm592_vm1, %v3931_v6  ;;  %3716 = vmatmul.msk.bf16.gmra.mxu2 %vm592_vm1, %v3931_v6 }
 0x2ca   :  { %v2570_v14 = vadd.f32 %v4811_v50, %v2439_v13  ;;  %3780 = vmatmul.msk.bf16.gmra.mxu3 %vm592_vm1, %v3931_v6 }
 0x2cc   :  { %v2698_v16 = vmax.f32 %v2570_v14, 0.0  ;;  %v1640_v17 = vpop.f32.mrf.mxu2 }
 0x2cd   :  { %v1969_v19 = vpop.f32.mrf.mxu3  ;;  %v984_v20 = vpop.f32.mrf.mxu0 }
 0x2ce   :  { %v4142_v21 = vpack.c.bf16 %v2698_v16, %v2697_v15  ;;  %v1313_v22 = vpop.f32.mrf.mxu1  ;;  %v2312_v24 = vmax.f32 %v1640_v17, %v1969_v19 }
 0x2cf   :  { %v2185_v30 = vmax.f32 %v984_v20, %v1313_v22 }
 0x2d0   :  { %4322 = vst [vmem:[#allocation2 + $0x110] sm:$0xff] %v4142_v21   ;;  %v2440_v25 = vmax.f32 %v2184_v23, %v2312_v24  ;;  %v3935_v24 = vld [vmem:[%s5196_s0 + $0x178] sm:$0xff] }
 0x2d2   :  { %v2571_v33 = vadd.f32 %v4811_v50, %v2440_v25 }
 0x2d4   :  { %v1642_v26 = vpop.f32.mrf.mxu2  ;;  %v2699_v36 = vmax.f32 %v2571_v33, 0.0 }
 0x2d5   :  { %v1971_v28 = vpop.f32.mrf.mxu3  ;;  %v987_v29 = vpop.f32.mrf.mxu0 }
 0x2d6   :  { %v2313_v31 = vmax.f32 %v1642_v26, %v1971_v28  ;;  %v1316_v32 = vpop.f32.mrf.mxu1 }
 0x2d7   :  { %v2186_v43 = vmax.f32 %v987_v29, %v1316_v32 }
 0x2d8   :  { %v2441_v34 = vmax.f32 %v2185_v30, %v2313_v31  ;;  %3589 = vmatmul.msk.bf16.gmra.mxu0 %vm592_vm1, %v3932_v27 }
 0x2d9   :  { %3653 = vmatmul.msk.bf16.gmra.mxu1 %vm592_vm1, %v3932_v27  ;;  %3717 = vmatmul.msk.bf16.gmra.mxu2 %vm592_vm1, %v3932_v27 }
 0x2da   :  { %v2572_v35 = vadd.f32 %v4811_v50, %v2441_v34  ;;  %3781 = vmatmul.msk.bf16.gmra.mxu3 %vm592_vm1, %v3932_v27 }
 0x2dc   :  { %v2700_v37 = vmax.f32 %v2572_v35, 0.0  ;;  %v1645_v38 = vpop.f32.mrf.mxu2 }
 0x2dd   :  { %v1974_v39 = vpop.f32.mrf.mxu3  ;;  %v989_v40 = vpop.f32.mrf.mxu0 }
 0x2de   :  { %v4147_v41 = vpack.c.bf16 %v2700_v37, %v2699_v36  ;;  %v1318_v42 = vpop.f32.mrf.mxu1  ;;  %v2314_v44 = vmax.f32 %v1645_v38, %v1974_v39 }
 0x2df   :  { %v2187_v51 = vmax.f32 %v989_v40, %v1318_v42 }
 0x2e0   :  { %4323 = vst [vmem:[#allocation2 + $0x118] sm:$0xff] %v4147_v41   ;;  %v2442_v45 = vmax.f32 %v2186_v43, %v2314_v44  ;;  %v3936_v44 = vld [vmem:[%s5196_s0 + $0x180] sm:$0xff] }
 0x2e2   :  { %v2573_v54 = vadd.f32 %v4811_v50, %v2442_v45 }
 0x2e4   :  { %v1647_v46 = vpop.f32.mrf.mxu2  ;;  %v2701_v56 = vmax.f32 %v2573_v54, 0.0 }
 0x2e5   :  { %v1976_v48 = vpop.f32.mrf.mxu3  ;;  %v992_v49 = vpop.f32.mrf.mxu0 }
 0x2e6   :  { %v2315_v52 = vmax.f32 %v1647_v46, %v1976_v48  ;;  %v1321_v53 = vpop.f32.mrf.mxu1 }
 0x2e7   :  { %v2188_v63 = vmax.f32 %v992_v49, %v1321_v53 }
 0x2e8   :  { %v2443_v18 = vmax.f32 %v2187_v51, %v2315_v52  ;;  %3590 = vmatmul.msk.bf16.gmra.mxu0 %vm592_vm1, %v3933_v47 }
 0x2e9   :  { %3654 = vmatmul.msk.bf16.gmra.mxu1 %vm592_vm1, %v3933_v47  ;;  %3718 = vmatmul.msk.bf16.gmra.mxu2 %vm592_vm1, %v3933_v47 }
 0x2ea   :  { %v2574_v55 = vadd.f32 %v4811_v50, %v2443_v18  ;;  %3782 = vmatmul.msk.bf16.gmra.mxu3 %vm592_vm1, %v3933_v47 }
 0x2ec   :  { %v2702_v57 = vmax.f32 %v2574_v55, 0.0  ;;  %v1650_v58 = vpop.f32.mrf.mxu2 }
 0x2ed   :  { %v1979_v59 = vpop.f32.mrf.mxu3  ;;  %v994_v60 = vpop.f32.mrf.mxu0 }
 0x2ee   :  { %v4152_v61 = vpack.c.bf16 %v2702_v57, %v2701_v56  ;;  %v1323_v62 = vpop.f32.mrf.mxu1  ;;  %v2316_v0 = vmax.f32 %v1650_v58, %v1979_v59 }
 0x2ef   :  { %v2189_v6 = vmax.f32 %v994_v60, %v1323_v62 }
 0x2f0   :  { %4324 = vst [vmem:[#allocation2 + $0x120] sm:$0xff] %v4152_v61   ;;  %v2444_v1 = vmax.f32 %v2188_v63, %v2316_v0  ;;  %v3937_v0 = vld [vmem:[%s5196_s0 + $0x188] sm:$0xff] }
 0x2f2   :  { %v2575_v9 = vadd.f32 %v4811_v50, %v2444_v1 }
 0x2f4   :  { %v1652_v2 = vpop.f32.mrf.mxu2  ;;  %v2703_v12 = vmax.f32 %v2575_v9, 0.0 }
 0x2f5   :  { %v1981_v4 = vpop.f32.mrf.mxu3  ;;  %v997_v5 = vpop.f32.mrf.mxu0 }
 0x2f6   :  { %v2317_v7 = vmax.f32 %v1652_v2, %v1981_v4  ;;  %v1326_v8 = vpop.f32.mrf.mxu1 }
 0x2f7   :  { %v2190_v20 = vmax.f32 %v997_v5, %v1326_v8 }
 0x2f8   :  { %v2445_v10 = vmax.f32 %v2189_v6, %v2317_v7  ;;  %3591 = vmatmul.msk.bf16.gmra.mxu0 %vm592_vm1, %v3934_v3 }
 0x2f9   :  { %3655 = vmatmul.msk.bf16.gmra.mxu1 %vm592_vm1, %v3934_v3  ;;  %3719 = vmatmul.msk.bf16.gmra.mxu2 %vm592_vm1, %v3934_v3 }
 0x2fa   :  { %v2576_v11 = vadd.f32 %v4811_v50, %v2445_v10  ;;  %3783 = vmatmul.msk.bf16.gmra.mxu3 %vm592_vm1, %v3934_v3 }
 0x2fc   :  { %v2704_v13 = vmax.f32 %v2576_v11, 0.0  ;;  %v1655_v14 = vpop.f32.mrf.mxu2 }
 0x2fd   :  { %v1984_v15 = vpop.f32.mrf.mxu3  ;;  %v999_v16 = vpop.f32.mrf.mxu0 }
 0x2fe   :  { %v4157_v17 = vpack.c.bf16 %v2704_v13, %v2703_v12  ;;  %v1328_v19 = vpop.f32.mrf.mxu1  ;;  %v2318_v21 = vmax.f32 %v1655_v14, %v1984_v15 }
 0x2ff   :  { %v2191_v27 = vmax.f32 %v999_v16, %v1328_v19 }
 0x300   :  { %4325 = vst [vmem:[#allocation2 + $0x128] sm:$0xff] %v4157_v17   ;;  %v2446_v22 = vmax.f32 %v2190_v20, %v2318_v21  ;;  %v3938_v21 = vld [vmem:[%s5196_s0 + $0x190] sm:$0xff] }
 0x302   :  { %v2577_v30 = vadd.f32 %v4811_v50, %v2446_v22 }
 0x304   :  { %v1657_v23 = vpop.f32.mrf.mxu2  ;;  %v2705_v33 = vmax.f32 %v2577_v30, 0.0 }
 0x305   :  { %v1986_v25 = vpop.f32.mrf.mxu3  ;;  %v1002_v26 = vpop.f32.mrf.mxu0 }
 0x306   :  { %v2319_v28 = vmax.f32 %v1657_v23, %v1986_v25  ;;  %v1331_v29 = vpop.f32.mrf.mxu1 }
 0x307   :  { %v2192_v40 = vmax.f32 %v1002_v26, %v1331_v29  ;;  %v5001_v26 = vld [vmem:[%s5197_s2] ss:$0 sm:$0xff] }
 0x308   :  { %v2447_v31 = vmax.f32 %v2191_v27, %v2319_v28  ;;  %3592 = vmatmul.msk.bf16.gmra.mxu0 %vm592_vm1, %v3935_v24 }
 0x309   :  { %3656 = vmatmul.msk.bf16.gmra.mxu1 %vm592_vm1, %v3935_v24  ;;  %3720 = vmatmul.msk.bf16.gmra.mxu2 %vm592_vm1, %v3935_v24 }
 0x30a   :  { %v2578_v32 = vadd.f32 %v4811_v50, %v2447_v31  ;;  %3784 = vmatmul.msk.bf16.gmra.mxu3 %vm592_vm1, %v3935_v24 }
 0x30c   :  { %v2706_v34 = vmax.f32 %v2578_v32, 0.0  ;;  %v1660_v35 = vpop.f32.mrf.mxu2 }
 0x30d   :  { %v1989_v36 = vpop.f32.mrf.mxu3  ;;  %v1004_v37 = vpop.f32.mrf.mxu0 }
 0x30e   :  { %v4162_v38 = vpack.c.bf16 %v2706_v34, %v2705_v33  ;;  %v1333_v39 = vpop.f32.mrf.mxu1  ;;  %v2320_v41 = vmax.f32 %v1660_v35, %v1989_v36 }
 0x30f   :  { %v2193_v47 = vmax.f32 %v1004_v37, %v1333_v39 }
 0x310   :  { %4326 = vst [vmem:[#allocation2 + $0x130] sm:$0xff] %v4162_v38   ;;  %v2448_v42 = vmax.f32 %v2192_v40, %v2320_v41  ;;  %v3939_v41 = vld [vmem:[%s5196_s0 + $0x198] sm:$0xff] }
 0x312   :  { %v2579_v51 = vadd.f32 %v4811_v50, %v2448_v42 }
 0x314   :  { %v1662_v43 = vpop.f32.mrf.mxu2  ;;  %v2707_v54 = vmax.f32 %v2579_v51, 0.0 }
 0x315   :  { %v1991_v45 = vpop.f32.mrf.mxu3  ;;  %v1007_v46 = vpop.f32.mrf.mxu0 }
 0x316   :  { %v2321_v48 = vmax.f32 %v1662_v43, %v1991_v45  ;;  %v1336_v49 = vpop.f32.mrf.mxu1 }
 0x317   :  { %v2194_v60 = vmax.f32 %v1007_v46, %v1336_v49 }
 0x318   :  { %v2449_v52 = vmax.f32 %v2193_v47, %v2321_v48  ;;  %3593 = vmatmul.msk.bf16.gmra.mxu0 %vm592_vm1, %v3936_v44 }
 0x319   :  { %3657 = vmatmul.msk.bf16.gmra.mxu1 %vm592_vm1, %v3936_v44  ;;  %3721 = vmatmul.msk.bf16.gmra.mxu2 %vm592_vm1, %v3936_v44 }
 0x31a   :  { %v2580_v53 = vadd.f32 %v4811_v50, %v2449_v52  ;;  %3785 = vmatmul.msk.bf16.gmra.mxu3 %vm592_vm1, %v3936_v44 }
 0x31c   :  { %v2708_v18 = vmax.f32 %v2580_v53, 0.0  ;;  %v1665_v55 = vpop.f32.mrf.mxu2 }
 0x31d   :  { %v1994_v56 = vpop.f32.mrf.mxu3  ;;  %v1009_v57 = vpop.f32.mrf.mxu0 }
 0x31e   :  { %v4167_v58 = vpack.c.bf16 %v2708_v18, %v2707_v54  ;;  %v1338_v59 = vpop.f32.mrf.mxu1  ;;  %v2322_v61 = vmax.f32 %v1665_v55, %v1994_v56 }
 0x31f   :  { %v2195_v3 = vmax.f32 %v1009_v57, %v1338_v59 }
 0x320   :  { %4327 = vst [vmem:[#allocation2 + $0x138] sm:$0xff] %v4167_v58   ;;  %v2450_v62 = vmax.f32 %v2194_v60, %v2322_v61  ;;  %v3940_v61 = vld [vmem:[%s5196_s0 + $0x1a0] sm:$0xff] }
 0x322   :  { %v2581_v6 = vadd.f32 %v4811_v50, %v2450_v62 }
 0x324   :  { %v1667_v63 = vpop.f32.mrf.mxu2  ;;  %v2709_v9 = vmax.f32 %v2581_v6, 0.0 }
 0x325   :  { %v1996_v1 = vpop.f32.mrf.mxu3  ;;  %v1012_v2 = vpop.f32.mrf.mxu0 }
 0x326   :  { %v2323_v4 = vmax.f32 %v1667_v63, %v1996_v1  ;;  %v1341_v5 = vpop.f32.mrf.mxu1 }
 0x327   :  { %v2196_v16 = vmax.f32 %v1012_v2, %v1341_v5 }
 0x328   :  { %v2451_v7 = vmax.f32 %v2195_v3, %v2323_v4  ;;  %3594 = vmatmul.msk.bf16.gmra.mxu0 %vm592_vm1, %v3937_v0 }
 0x329   :  { %3658 = vmatmul.msk.bf16.gmra.mxu1 %vm592_vm1, %v3937_v0  ;;  %3722 = vmatmul.msk.bf16.gmra.mxu2 %vm592_vm1, %v3937_v0 }
 0x32a   :  { %v2582_v8 = vadd.f32 %v4811_v50, %v2451_v7  ;;  %3786 = vmatmul.msk.bf16.gmra.mxu3 %vm592_vm1, %v3937_v0 }
 0x32c   :  { %v2710_v10 = vmax.f32 %v2582_v8, 0.0  ;;  %v1670_v11 = vpop.f32.mrf.mxu2 }
 0x32d   :  { %v1999_v12 = vpop.f32.mrf.mxu3  ;;  %v1014_v13 = vpop.f32.mrf.mxu0 }
 0x32e   :  { %v4172_v14 = vpack.c.bf16 %v2710_v10, %v2709_v9  ;;  %v1343_v15 = vpop.f32.mrf.mxu1  ;;  %v2324_v17 = vmax.f32 %v1670_v11, %v1999_v12 }
 0x32f   :  { %v2197_v23 = vmax.f32 %v1014_v13, %v1343_v15 }
 0x330   :  { %4328 = vst [vmem:[#allocation2 + $0x140] sm:$0xff] %v4172_v14   ;;  %v2452_v19 = vmax.f32 %v2196_v16, %v2324_v17  ;;  %v3941_v17 = vld [vmem:[%s5196_s0 + $0x1a8] sm:$0xff] }
 0x332   :  { %v2583_v27 = vadd.f32 %v5001_v26, %v2452_v19 }
 0x334   :  { %v1672_v20 = vpop.f32.mrf.mxu2  ;;  %v2711_v30 = vmax.f32 %v2583_v27, 0.0 }
 0x335   :  { %v2001_v22 = vpop.f32.mrf.mxu3  ;;  %v1017_v50 = vpop.f32.mrf.mxu0 }
 0x336   :  { %v2325_v24 = vmax.f32 %v1672_v20, %v2001_v22  ;;  %v1346_v25 = vpop.f32.mrf.mxu1 }
 0x337   :  { %v2198_v37 = vmax.f32 %v1017_v50, %v1346_v25 }
 0x338   :  { %v2453_v28 = vmax.f32 %v2197_v23, %v2325_v24  ;;  %3595 = vmatmul.msk.bf16.gmra.mxu0 %vm592_vm1, %v3938_v21 }
 0x339   :  { %3659 = vmatmul.msk.bf16.gmra.mxu1 %vm592_vm1, %v3938_v21  ;;  %3723 = vmatmul.msk.bf16.gmra.mxu2 %vm592_vm1, %v3938_v21 }
 0x33a   :  { %v2584_v29 = vadd.f32 %v5001_v26, %v2453_v28  ;;  %3787 = vmatmul.msk.bf16.gmra.mxu3 %vm592_vm1, %v3938_v21 }
 0x33c   :  { %v2712_v31 = vmax.f32 %v2584_v29, 0.0  ;;  %v1675_v32 = vpop.f32.mrf.mxu2 }
 0x33d   :  { %v2004_v33 = vpop.f32.mrf.mxu3  ;;  %v1019_v34 = vpop.f32.mrf.mxu0 }
 0x33e   :  { %v4177_v35 = vpack.c.bf16 %v2712_v31, %v2711_v30  ;;  %v1348_v36 = vpop.f32.mrf.mxu1  ;;  %v2326_v38 = vmax.f32 %v1675_v32, %v2004_v33 }
 0x33f   :  { %v2199_v44 = vmax.f32 %v1019_v34, %v1348_v36 }
 0x340   :  { %4329 = vst [vmem:[#allocation2 + $0x148] sm:$0xff] %v4177_v35   ;;  %v2454_v39 = vmax.f32 %v2198_v37, %v2326_v38  ;;  %v3942_v38 = vld [vmem:[%s5196_s0 + $0x1b0] sm:$0xff] }
 0x342   :  { %v2585_v47 = vadd.f32 %v5001_v26, %v2454_v39 }
 0x344   :  { %v1677_v40 = vpop.f32.mrf.mxu2  ;;  %v2713_v51 = vmax.f32 %v2585_v47, 0.0 }
 0x345   :  { %v2006_v42 = vpop.f32.mrf.mxu3  ;;  %v1022_v43 = vpop.f32.mrf.mxu0 }
 0x346   :  { %v2327_v45 = vmax.f32 %v1677_v40, %v2006_v42  ;;  %v1351_v46 = vpop.f32.mrf.mxu1 }
 0x347   :  { %v2200_v57 = vmax.f32 %v1022_v43, %v1351_v46 }
 0x348   :  { %v2455_v48 = vmax.f32 %v2199_v44, %v2327_v45  ;;  %3596 = vmatmul.msk.bf16.gmra.mxu0 %vm592_vm1, %v3939_v41 }
 0x349   :  { %3660 = vmatmul.msk.bf16.gmra.mxu1 %vm592_vm1, %v3939_v41  ;;  %3724 = vmatmul.msk.bf16.gmra.mxu2 %vm592_vm1, %v3939_v41 }
 0x34a   :  { %v2586_v49 = vadd.f32 %v5001_v26, %v2455_v48  ;;  %3788 = vmatmul.msk.bf16.gmra.mxu3 %vm592_vm1, %v3939_v41 }
 0x34c   :  { %v2714_v52 = vmax.f32 %v2586_v49, 0.0  ;;  %v1680_v53 = vpop.f32.mrf.mxu2 }
 0x34d   :  { %v2009_v54 = vpop.f32.mrf.mxu3  ;;  %v1024_v18 = vpop.f32.mrf.mxu0 }
 0x34e   :  { %v4182_v55 = vpack.c.bf16 %v2714_v52, %v2713_v51  ;;  %v1353_v56 = vpop.f32.mrf.mxu1  ;;  %v2328_v58 = vmax.f32 %v1680_v53, %v2009_v54 }
 0x34f   :  { %v2201_v0 = vmax.f32 %v1024_v18, %v1353_v56 }
 0x350   :  { %4330 = vst [vmem:[#allocation2 + $0x150] sm:$0xff] %v4182_v55   ;;  %v2456_v59 = vmax.f32 %v2200_v57, %v2328_v58  ;;  %v3943_v58 = vld [vmem:[%s5196_s0 + $0x1b8] sm:$0xff] }
 0x352   :  { %v2587_v3 = vadd.f32 %v5001_v26, %v2456_v59 }
 0x354   :  { %v1682_v60 = vpop.f32.mrf.mxu2  ;;  %v2715_v6 = vmax.f32 %v2587_v3, 0.0 }
 0x355   :  { %v2011_v62 = vpop.f32.mrf.mxu3  ;;  %v1027_v63 = vpop.f32.mrf.mxu0 }
 0x356   :  { %v2329_v1 = vmax.f32 %v1682_v60, %v2011_v62  ;;  %v1356_v2 = vpop.f32.mrf.mxu1 }
 0x357   :  { %v2202_v13 = vmax.f32 %v1027_v63, %v1356_v2 }
 0x358   :  { %v2457_v4 = vmax.f32 %v2201_v0, %v2329_v1  ;;  %3597 = vmatmul.msk.bf16.gmra.mxu0 %vm592_vm1, %v3940_v61 }
 0x359   :  { %3661 = vmatmul.msk.bf16.gmra.mxu1 %vm592_vm1, %v3940_v61  ;;  %3725 = vmatmul.msk.bf16.gmra.mxu2 %vm592_vm1, %v3940_v61 }
 0x35a   :  { %v2588_v5 = vadd.f32 %v5001_v26, %v2457_v4  ;;  %3789 = vmatmul.msk.bf16.gmra.mxu3 %vm592_vm1, %v3940_v61 }
 0x35c   :  { %v2716_v7 = vmax.f32 %v2588_v5, 0.0  ;;  %v1685_v8 = vpop.f32.mrf.mxu2 }
 0x35d   :  { %v2014_v9 = vpop.f32.mrf.mxu3  ;;  %v1029_v10 = vpop.f32.mrf.mxu0 }
 0x35e   :  { %v4187_v11 = vpack.c.bf16 %v2716_v7, %v2715_v6  ;;  %v1358_v12 = vpop.f32.mrf.mxu1  ;;  %v2330_v14 = vmax.f32 %v1685_v8, %v2014_v9 }
 0x35f   :  { %v2203_v21 = vmax.f32 %v1029_v10, %v1358_v12 }
 0x360   :  { %4331 = vst [vmem:[#allocation2 + $0x158] sm:$0xff] %v4187_v11   ;;  %v2458_v15 = vmax.f32 %v2202_v13, %v2330_v14  ;;  %v3944_v14 = vld [vmem:[%s5196_s0 + $0x1c0] sm:$0xff] }
 0x362   :  { %v2589_v23 = vadd.f32 %v5001_v26, %v2458_v15 }
 0x364   :  { %v1687_v16 = vpop.f32.mrf.mxu2  ;;  %v2717_v27 = vmax.f32 %v2589_v23, 0.0 }
 0x365   :  { %v2016_v19 = vpop.f32.mrf.mxu3  ;;  %v1032_v20 = vpop.f32.mrf.mxu0 }
 0x366   :  { %v2331_v22 = vmax.f32 %v1687_v16, %v2016_v19  ;;  %v1361_v50 = vpop.f32.mrf.mxu1 }
 0x367   :  { %v2204_v34 = vmax.f32 %v1032_v20, %v1361_v50 }
 0x368   :  { %v2459_v24 = vmax.f32 %v2203_v21, %v2331_v22  ;;  %3598 = vmatmul.msk.bf16.gmra.mxu0 %vm592_vm1, %v3941_v17 }
 0x369   :  { %3662 = vmatmul.msk.bf16.gmra.mxu1 %vm592_vm1, %v3941_v17  ;;  %3726 = vmatmul.msk.bf16.gmra.mxu2 %vm592_vm1, %v3941_v17 }
 0x36a   :  { %v2590_v25 = vadd.f32 %v5001_v26, %v2459_v24  ;;  %3790 = vmatmul.msk.bf16.gmra.mxu3 %vm592_vm1, %v3941_v17 }
 0x36c   :  { %v2718_v28 = vmax.f32 %v2590_v25, 0.0  ;;  %v1690_v29 = vpop.f32.mrf.mxu2 }
 0x36d   :  { %v2019_v30 = vpop.f32.mrf.mxu3  ;;  %v1034_v31 = vpop.f32.mrf.mxu0 }
 0x36e   :  { %v4192_v32 = vpack.c.bf16 %v2718_v28, %v2717_v27  ;;  %v1363_v33 = vpop.f32.mrf.mxu1  ;;  %v2332_v35 = vmax.f32 %v1690_v29, %v2019_v30 }
 0x36f   :  { %v2205_v41 = vmax.f32 %v1034_v31, %v1363_v33 }
 0x370   :  { %4332 = vst [vmem:[#allocation2 + $0x160] sm:$0xff] %v4192_v32   ;;  %v2460_v36 = vmax.f32 %v2204_v34, %v2332_v35  ;;  %v3945_v35 = vld [vmem:[%s5196_s0 + $0x1c8] sm:$0xff] }
 0x372   :  { %v2591_v44 = vadd.f32 %v5001_v26, %v2460_v36 }
 0x374   :  { %v1692_v37 = vpop.f32.mrf.mxu2  ;;  %v2719_v47 = vmax.f32 %v2591_v44, 0.0 }
 0x375   :  { %v2021_v39 = vpop.f32.mrf.mxu3  ;;  %v1037_v40 = vpop.f32.mrf.mxu0 }
 0x376   :  { %v2333_v42 = vmax.f32 %v1692_v37, %v2021_v39  ;;  %v1366_v43 = vpop.f32.mrf.mxu1 }
 0x377   :  { %v2206_v18 = vmax.f32 %v1037_v40, %v1366_v43 }
 0x378   :  { %v2461_v45 = vmax.f32 %v2205_v41, %v2333_v42  ;;  %3599 = vmatmul.msk.bf16.gmra.mxu0 %vm592_vm1, %v3942_v38 }
 0x379   :  { %3663 = vmatmul.msk.bf16.gmra.mxu1 %vm592_vm1, %v3942_v38  ;;  %3727 = vmatmul.msk.bf16.gmra.mxu2 %vm592_vm1, %v3942_v38 }
 0x37a   :  { %v2592_v46 = vadd.f32 %v5001_v26, %v2461_v45  ;;  %3791 = vmatmul.msk.bf16.gmra.mxu3 %vm592_vm1, %v3942_v38 }
 0x37c   :  { %v2720_v48 = vmax.f32 %v2592_v46, 0.0  ;;  %v1695_v49 = vpop.f32.mrf.mxu2 }
 0x37d   :  { %v2024_v51 = vpop.f32.mrf.mxu3  ;;  %v1039_v52 = vpop.f32.mrf.mxu0 }
 0x37e   :  { %v4197_v53 = vpack.c.bf16 %v2720_v48, %v2719_v47  ;;  %v1368_v54 = vpop.f32.mrf.mxu1  ;;  %v2334_v55 = vmax.f32 %v1695_v49, %v2024_v51 }
 0x37f   :  { %v2207_v61 = vmax.f32 %v1039_v52, %v1368_v54 }
 0x380   :  { %4333 = vst [vmem:[#allocation2 + $0x168] sm:$0xff] %v4197_v53   ;;  %v2462_v56 = vmax.f32 %v2206_v18, %v2334_v55  ;;  %v3946_v55 = vld [vmem:[%s5196_s0 + $0x1d0] sm:$0xff] }
 0x382   :  { %v2593_v0 = vadd.f32 %v5001_v26, %v2462_v56 }
 0x384   :  { %v1697_v57 = vpop.f32.mrf.mxu2  ;;  %v2721_v3 = vmax.f32 %v2593_v0, 0.0 }
 0x385   :  { %v2026_v59 = vpop.f32.mrf.mxu3  ;;  %v1042_v60 = vpop.f32.mrf.mxu0 }
 0x386   :  { %v2335_v62 = vmax.f32 %v1697_v57, %v2026_v59  ;;  %v1371_v63 = vpop.f32.mrf.mxu1 }
 0x387   :  { %v2208_v10 = vmax.f32 %v1042_v60, %v1371_v63 }
 0x388   :  { %v2463_v1 = vmax.f32 %v2207_v61, %v2335_v62  ;;  %3600 = vmatmul.msk.bf16.gmra.mxu0 %vm592_vm1, %v3943_v58 }
 0x389   :  { %3664 = vmatmul.msk.bf16.gmra.mxu1 %vm592_vm1, %v3943_v58  ;;  %3728 = vmatmul.msk.bf16.gmra.mxu2 %vm592_vm1, %v3943_v58 }
 0x38a   :  { %v2594_v2 = vadd.f32 %v5001_v26, %v2463_v1  ;;  %3792 = vmatmul.msk.bf16.gmra.mxu3 %vm592_vm1, %v3943_v58 }
 0x38c   :  { %v2722_v4 = vmax.f32 %v2594_v2, 0.0  ;;  %v1700_v5 = vpop.f32.mrf.mxu2 }
 0x38d   :  { %v2029_v6 = vpop.f32.mrf.mxu3  ;;  %v1044_v7 = vpop.f32.mrf.mxu0 }
 0x38e   :  { %v4202_v8 = vpack.c.bf16 %v2722_v4, %v2721_v3  ;;  %v1373_v9 = vpop.f32.mrf.mxu1  ;;  %v2336_v11 = vmax.f32 %v1700_v5, %v2029_v6 }
 0x38f   :  { %v2209_v17 = vmax.f32 %v1044_v7, %v1373_v9 }
 0x390   :  { %4334 = vst [vmem:[#allocation2 + $0x170] sm:$0xff] %v4202_v8   ;;  %v2464_v12 = vmax.f32 %v2208_v10, %v2336_v11  ;;  %v3947_v11 = vld [vmem:[%s5196_s0 + $0x1d8] sm:$0xff] }
 0x392   :  { %v2595_v21 = vadd.f32 %v5001_v26, %v2464_v12 }
 0x394   :  { %v1702_v13 = vpop.f32.mrf.mxu2  ;;  %v2723_v23 = vmax.f32 %v2595_v21, 0.0 }
 0x395   :  { %v2031_v15 = vpop.f32.mrf.mxu3  ;;  %v1047_v16 = vpop.f32.mrf.mxu0 }
 0x396   :  { %v2337_v19 = vmax.f32 %v1702_v13, %v2031_v15  ;;  %v1376_v20 = vpop.f32.mrf.mxu1 }
 0x397   :  { %v2210_v31 = vmax.f32 %v1047_v16, %v1376_v20 }
 0x398   :  { %v2465_v22 = vmax.f32 %v2209_v17, %v2337_v19  ;;  %3601 = vmatmul.msk.bf16.gmra.mxu0 %vm592_vm1, %v3944_v14 }
 0x399   :  { %3665 = vmatmul.msk.bf16.gmra.mxu1 %vm592_vm1, %v3944_v14  ;;  %3729 = vmatmul.msk.bf16.gmra.mxu2 %vm592_vm1, %v3944_v14 }
 0x39a   :  { %v2596_v50 = vadd.f32 %v5001_v26, %v2465_v22  ;;  %3793 = vmatmul.msk.bf16.gmra.mxu3 %vm592_vm1, %v3944_v14 }
 0x39c   :  { %v2724_v24 = vmax.f32 %v2596_v50, 0.0  ;;  %v1705_v25 = vpop.f32.mrf.mxu2 }
 0x39d   :  { %v2034_v27 = vpop.f32.mrf.mxu3  ;;  %v1049_v28 = vpop.f32.mrf.mxu0 }
 0x39e   :  { %v4207_v29 = vpack.c.bf16 %v2724_v24, %v2723_v23  ;;  %v1378_v30 = vpop.f32.mrf.mxu1  ;;  %v2338_v32 = vmax.f32 %v1705_v25, %v2034_v27 }
 0x39f   :  { %v2211_v38 = vmax.f32 %v1049_v28, %v1378_v30 }
 0x3a0   :  { %4335 = vst [vmem:[#allocation2 + $0x178] sm:$0xff] %v4207_v29   ;;  %v2466_v33 = vmax.f32 %v2210_v31, %v2338_v32  ;;  %v3948_v32 = vld [vmem:[%s5196_s0 + $0x1e0] sm:$0xff] }
 0x3a2   :  { %v2597_v41 = vadd.f32 %v5001_v26, %v2466_v33 }
 0x3a4   :  { %v1707_v34 = vpop.f32.mrf.mxu2  ;;  %v2725_v44 = vmax.f32 %v2597_v41, 0.0 }
 0x3a5   :  { %v2036_v36 = vpop.f32.mrf.mxu3  ;;  %v1052_v37 = vpop.f32.mrf.mxu0 }
 0x3a6   :  { %v2339_v39 = vmax.f32 %v1707_v34, %v2036_v36  ;;  %v1381_v40 = vpop.f32.mrf.mxu1 }
 0x3a7   :  { %v2212_v52 = vmax.f32 %v1052_v37, %v1381_v40 }
 0x3a8   :  { %v2467_v42 = vmax.f32 %v2211_v38, %v2339_v39  ;;  %3602 = vmatmul.msk.bf16.gmra.mxu0 %vm592_vm1, %v3945_v35 }
 0x3a9   :  { %3666 = vmatmul.msk.bf16.gmra.mxu1 %vm592_vm1, %v3945_v35  ;;  %3730 = vmatmul.msk.bf16.gmra.mxu2 %vm592_vm1, %v3945_v35 }
 0x3aa   :  { %v2598_v43 = vadd.f32 %v5001_v26, %v2467_v42  ;;  %3794 = vmatmul.msk.bf16.gmra.mxu3 %vm592_vm1, %v3945_v35 }
 0x3ac   :  { %v2726_v45 = vmax.f32 %v2598_v43, 0.0  ;;  %v1710_v46 = vpop.f32.mrf.mxu2 }
 0x3ad   :  { %v2039_v47 = vpop.f32.mrf.mxu3  ;;  %v1054_v48 = vpop.f32.mrf.mxu0 }
 0x3ae   :  { %v4212_v49 = vpack.c.bf16 %v2726_v45, %v2725_v44  ;;  %v1383_v51 = vpop.f32.mrf.mxu1  ;;  %v2340_v53 = vmax.f32 %v1710_v46, %v2039_v47 }
 0x3af   :  { %v2213_v58 = vmax.f32 %v1054_v48, %v1383_v51 }
 0x3b0   :  { %4336 = vst [vmem:[#allocation2 + $0x180] sm:$0xff] %v4212_v49   ;;  %v2468_v54 = vmax.f32 %v2212_v52, %v2340_v53  ;;  %v3949_v53 = vld [vmem:[%s5196_s0 + $0x1e8] sm:$0xff] }
 0x3b2   :  { %v2599_v61 = vadd.f32 %v5001_v26, %v2468_v54 }
 0x3b4   :  { %v1712_v18 = vpop.f32.mrf.mxu2  ;;  %v2727_v0 = vmax.f32 %v2599_v61, 0.0 }
 0x3b5   :  { %v2041_v56 = vpop.f32.mrf.mxu3  ;;  %v1057_v57 = vpop.f32.mrf.mxu0 }
 0x3b6   :  { %v2341_v59 = vmax.f32 %v1712_v18, %v2041_v56  ;;  %v1386_v60 = vpop.f32.mrf.mxu1 }
 0x3b7   :  { %v2214_v7 = vmax.f32 %v1057_v57, %v1386_v60 }
 0x3b8   :  { %v2469_v62 = vmax.f32 %v2213_v58, %v2341_v59  ;;  %3603 = vmatmul.msk.bf16.gmra.mxu0 %vm592_vm1, %v3946_v55 }
 0x3b9   :  { %3667 = vmatmul.msk.bf16.gmra.mxu1 %vm592_vm1, %v3946_v55  ;;  %3731 = vmatmul.msk.bf16.gmra.mxu2 %vm592_vm1, %v3946_v55 }
 0x3ba   :  { %v2600_v63 = vadd.f32 %v5001_v26, %v2469_v62  ;;  %3795 = vmatmul.msk.bf16.gmra.mxu3 %vm592_vm1, %v3946_v55 }
 0x3bc   :  { %v2728_v1 = vmax.f32 %v2600_v63, 0.0  ;;  %v1715_v2 = vpop.f32.mrf.mxu2 }
 0x3bd   :  { %v2044_v3 = vpop.f32.mrf.mxu3  ;;  %v1059_v4 = vpop.f32.mrf.mxu0 }
 0x3be   :  { %v4217_v5 = vpack.c.bf16 %v2728_v1, %v2727_v0  ;;  %v1388_v6 = vpop.f32.mrf.mxu1  ;;  %v2342_v8 = vmax.f32 %v1715_v2, %v2044_v3 }
 0x3bf   :  { %v2215_v14 = vmax.f32 %v1059_v4, %v1388_v6 }
 0x3c0   :  { %4337 = vst [vmem:[#allocation2 + $0x188] sm:$0xff] %v4217_v5   ;;  %v2470_v9 = vmax.f32 %v2214_v7, %v2342_v8  ;;  %v3950_v8 = vld [vmem:[%s5196_s0 + $0x1f0] sm:$0xff] }
 0x3c2   :  { %v2601_v17 = vadd.f32 %v5001_v26, %v2470_v9 }
 0x3c4   :  { %v1717_v10 = vpop.f32.mrf.mxu2  ;;  %v2729_v21 = vmax.f32 %v2601_v17, 0.0 }
 0x3c5   :  { %v2046_v12 = vpop.f32.mrf.mxu3  ;;  %v1062_v13 = vpop.f32.mrf.mxu0 }
 0x3c6   :  { %v2343_v15 = vmax.f32 %v1717_v10, %v2046_v12  ;;  %v1391_v16 = vpop.f32.mrf.mxu1 }
 0x3c7   :  { %v2216_v28 = vmax.f32 %v1062_v13, %v1391_v16 }
 0x3c8   :  { %v2471_v19 = vmax.f32 %v2215_v14, %v2343_v15  ;;  %3604 = vmatmul.msk.bf16.gmra.mxu0 %vm592_vm1, %v3947_v11 }
 0x3c9   :  { %3668 = vmatmul.msk.bf16.gmra.mxu1 %vm592_vm1, %v3947_v11  ;;  %3732 = vmatmul.msk.bf16.gmra.mxu2 %vm592_vm1, %v3947_v11 }
 0x3ca   :  { %v2602_v20 = vadd.f32 %v5001_v26, %v2471_v19  ;;  %3796 = vmatmul.msk.bf16.gmra.mxu3 %vm592_vm1, %v3947_v11 }
 0x3cc   :  { %v2730_v22 = vmax.f32 %v2602_v20, 0.0  ;;  %v1720_v50 = vpop.f32.mrf.mxu2 }
 0x3cd   :  { %v2049_v23 = vpop.f32.mrf.mxu3  ;;  %v1064_v24 = vpop.f32.mrf.mxu0 }
 0x3ce   :  { %v4222_v25 = vpack.c.bf16 %v2730_v22, %v2729_v21  ;;  %v1393_v27 = vpop.f32.mrf.mxu1  ;;  %v2344_v29 = vmax.f32 %v1720_v50, %v2049_v23 }
 0x3cf   :  { %v2217_v35 = vmax.f32 %v1064_v24, %v1393_v27 }
 0x3d0   :  { %4338 = vst [vmem:[#allocation2 + $0x190] sm:$0xff] %v4222_v25   ;;  %v2472_v30 = vmax.f32 %v2216_v28, %v2344_v29  ;;  %v3951_v29 = vld [vmem:[%s5196_s0 + $0x1f8] sm:$0xff]  ;;  %s5144_s0 = smov 0  }
 0x3d2   :  { %v2603_v38 = vadd.f32 %v5001_v26, %v2472_v30 }
 0x3d4   :  { %v1722_v31 = vpop.f32.mrf.mxu2  ;;  %v2731_v41 = vmax.f32 %v2603_v38, 0.0 }
 0x3d5   :  { %v2051_v33 = vpop.f32.mrf.mxu3  ;;  %v1067_v34 = vpop.f32.mrf.mxu0 }
 0x3d6   :  { %v2345_v36 = vmax.f32 %v1722_v31, %v2051_v33  ;;  %v1396_v37 = vpop.f32.mrf.mxu1 }
 0x3d7   :  { %v2218_v48 = vmax.f32 %v1067_v34, %v1396_v37 }
 0x3d8   :  { %v2473_v39 = vmax.f32 %v2217_v35, %v2345_v36  ;;  %3605 = vmatmul.msk.bf16.gmra.mxu0 %vm592_vm1, %v3948_v32 }
 0x3d9   :  { %3669 = vmatmul.msk.bf16.gmra.mxu1 %vm592_vm1, %v3948_v32  ;;  %3733 = vmatmul.msk.bf16.gmra.mxu2 %vm592_vm1, %v3948_v32 }
 0x3da   :  { %v2604_v40 = vadd.f32 %v5001_v26, %v2473_v39  ;;  %3797 = vmatmul.msk.bf16.gmra.mxu3 %vm592_vm1, %v3948_v32 }
 0x3dc   :  { %v2732_v42 = vmax.f32 %v2604_v40, 0.0  ;;  %v1725_v43 = vpop.f32.mrf.mxu2 }
 0x3dd   :  { %v2054_v44 = vpop.f32.mrf.mxu3  ;;  %v1069_v45 = vpop.f32.mrf.mxu0 }
 0x3de   :  { %v4227_v46 = vpack.c.bf16 %v2732_v42, %v2731_v41  ;;  %v1398_v47 = vpop.f32.mrf.mxu1  ;;  %v2346_v49 = vmax.f32 %v1725_v43, %v2054_v44 }
 0x3df   :  { %v2219_v55 = vmax.f32 %v1069_v45, %v1398_v47 }
 0x3e0   :  { %4339 = vst [vmem:[#allocation2 + $0x198] sm:$0xff] %v4227_v46   ;;  %v2474_v51 = vmax.f32 %v2218_v48, %v2346_v49 }
 0x3e2   :  { %v2605_v58 = vadd.f32 %v5001_v26, %v2474_v51 }
 0x3e4   :  { %v1727_v52 = vpop.f32.mrf.mxu2  ;;  %v2733_v61 = vmax.f32 %v2605_v58, 0.0 }
 0x3e5   :  { %v2056_v54 = vpop.f32.mrf.mxu3  ;;  %v1072_v18 = vpop.f32.mrf.mxu0 }
 0x3e6   :  { %v2347_v56 = vmax.f32 %v1727_v52, %v2056_v54  ;;  %v1401_v57 = vpop.f32.mrf.mxu1 }
 0x3e7   :  { %v2220_v4 = vmax.f32 %v1072_v18, %v1401_v57 }
 0x3e8   :  { %v2475_v59 = vmax.f32 %v2219_v55, %v2347_v56  ;;  %3606 = vmatmul.msk.bf16.gmra.mxu0 %vm592_vm1, %v3949_v53 }
 0x3e9   :  { %3670 = vmatmul.msk.bf16.gmra.mxu1 %vm592_vm1, %v3949_v53  ;;  %3734 = vmatmul.msk.bf16.gmra.mxu2 %vm592_vm1, %v3949_v53 }
 0x3ea   :  { %v2606_v60 = vadd.f32 %v5001_v26, %v2475_v59  ;;  %3798 = vmatmul.msk.bf16.gmra.mxu3 %vm592_vm1, %v3949_v53 }
 0x3ec   :  { %v2734_v62 = vmax.f32 %v2606_v60, 0.0  ;;  %v1730_v63 = vpop.f32.mrf.mxu2 }
 0x3ed   :  { %v2059_v0 = vpop.f32.mrf.mxu3  ;;  %v1074_v1 = vpop.f32.mrf.mxu0 }
 0x3ee   :  { %v4232_v2 = vpack.c.bf16 %v2734_v62, %v2733_v61  ;;  %v1403_v3 = vpop.f32.mrf.mxu1  ;;  %v2348_v5 = vmax.f32 %v1730_v63, %v2059_v0 }
 0x3ef   :  { %v2221_v11 = vmax.f32 %v1074_v1, %v1403_v3 }
 0x3f0   :  { %4340 = vst [vmem:[#allocation2 + $0x1a0] sm:$0xff] %v4232_v2   ;;  %v2476_v6 = vmax.f32 %v2220_v4, %v2348_v5 }
 0x3f2   :  { %v2607_v14 = vadd.f32 %v5001_v26, %v2476_v6 }
 0x3f4   :  { %v1732_v7 = vpop.f32.mrf.mxu2  ;;  %v2735_v17 = vmax.f32 %v2607_v14, 0.0 }
 0x3f5   :  { %v2061_v9 = vpop.f32.mrf.mxu3  ;;  %v1077_v10 = vpop.f32.mrf.mxu0 }
 0x3f6   :  { %v2349_v12 = vmax.f32 %v1732_v7, %v2061_v9  ;;  %v1406_v13 = vpop.f32.mrf.mxu1 }
 0x3f7   :  { %v2222_v24 = vmax.f32 %v1077_v10, %v1406_v13 }
 0x3f8   :  { %v2477_v15 = vmax.f32 %v2221_v11, %v2349_v12  ;;  %3607 = vmatmul.msk.bf16.gmra.mxu0 %vm592_vm1, %v3950_v8 }
 0x3f9   :  { %3671 = vmatmul.msk.bf16.gmra.mxu1 %vm592_vm1, %v3950_v8  ;;  %3735 = vmatmul.msk.bf16.gmra.mxu2 %vm592_vm1, %v3950_v8 }
 0x3fa   :  { %v2608_v16 = vadd.f32 %v5001_v26, %v2477_v15  ;;  %3799 = vmatmul.msk.bf16.gmra.mxu3 %vm592_vm1, %v3950_v8 }
 0x3fc   :  { %v2736_v19 = vmax.f32 %v2608_v16, 0.0  ;;  %v1735_v20 = vpop.f32.mrf.mxu2 }
 0x3fd   :  { %v2064_v21 = vpop.f32.mrf.mxu3  ;;  %v1079_v22 = vpop.f32.mrf.mxu0 }
 0x3fe   :  { %v4237_v50 = vpack.c.bf16 %v2736_v19, %v2735_v17  ;;  %v1408_v23 = vpop.f32.mrf.mxu1  ;;  %v2350_v25 = vmax.f32 %v1735_v20, %v2064_v21 }
 0x3ff   :  { %v2223_v32 = vmax.f32 %v1079_v22, %v1408_v23 }
 0x400   :  { %4341 = vst [vmem:[#allocation2 + $0x1a8] sm:$0xff] %v4237_v50   ;;  %v2478_v27 = vmax.f32 %v2222_v24, %v2350_v25 }
 0x402   :  { %v2609_v35 = vadd.f32 %v5001_v26, %v2478_v27 }
 0x404   :  { %v1737_v28 = vpop.f32.mrf.mxu2  ;;  %v2737_v38 = vmax.f32 %v2609_v35, 0.0 }
 0x405   :  { %v2066_v30 = vpop.f32.mrf.mxu3  ;;  %v1082_v31 = vpop.f32.mrf.mxu0 }
 0x406   :  { %v2351_v33 = vmax.f32 %v1737_v28, %v2066_v30  ;;  %v1411_v34 = vpop.f32.mrf.mxu1 }
 0x407   :  { %v2224_v45 = vmax.f32 %v1082_v31, %v1411_v34 }
 0x408   :  { %v2479_v36 = vmax.f32 %v2223_v32, %v2351_v33  ;;  %3608 = vmatmul.msk.bf16.gmra.mxu0 %vm592_vm1, %v3951_v29 }
 0x409   :  { %3672 = vmatmul.msk.bf16.gmra.mxu1 %vm592_vm1, %v3951_v29  ;;  %3736 = vmatmul.msk.bf16.gmra.mxu2 %vm592_vm1, %v3951_v29 }
 0x40a   :  { %v2610_v37 = vadd.f32 %v5001_v26, %v2479_v36  ;;  %3800 = vmatmul.msk.bf16.gmra.mxu3 %vm592_vm1, %v3951_v29 }
 0x40c   :  { %v2738_v39 = vmax.f32 %v2610_v37, 0.0  ;;  %v1740_v40 = vpop.f32.mrf.mxu2 }
 0x40d   :  { %v2069_v41 = vpop.f32.mrf.mxu3  ;;  %v1084_v42 = vpop.f32.mrf.mxu0 }
 0x40e   :  { %v4242_v43 = vpack.c.bf16 %v2738_v39, %v2737_v38  ;;  %v1413_v44 = vpop.f32.mrf.mxu1  ;;  %v2352_v46 = vmax.f32 %v1740_v40, %v2069_v41 }
 0x40f   :  { %v2225_v52 = vmax.f32 %v1084_v42, %v1413_v44 }
 0x410   :  { %4342 = vst [vmem:[#allocation2 + $0x1b0] sm:$0xff] %v4242_v43   ;;  %v2480_v47 = vmax.f32 %v2224_v45, %v2352_v46 }
 0x412   :  { %v2611_v18 = vadd.f32 %v5001_v26, %v2480_v47 }
 0x414   :  { %v1742_v48 = vpop.f32.mrf.mxu2  ;;  %v2739_v57 = vmax.f32 %v2611_v18, 0.0 }
 0x415   :  { %v2071_v49 = vpop.f32.mrf.mxu3  ;;  %v1087_v51 = vpop.f32.mrf.mxu0 }
 0x416   :  { %v2353_v53 = vmax.f32 %v1742_v48, %v2071_v49  ;;  %v1416_v54 = vpop.f32.mrf.mxu1 }
 0x417   :  { %v2226_v0 = vmax.f32 %v1087_v51, %v1416_v54 }
 0x418   :  { %v2481_v55 = vmax.f32 %v2225_v52, %v2353_v53 }
 0x41a   :  { %v2612_v56 = vadd.f32 %v5001_v26, %v2481_v55 }
 0x41c   :  { %v2740_v58 = vmax.f32 %v2612_v56, 0.0  ;;  %v1745_v59 = vpop.f32.mrf.mxu2 }
 0x41d   :  { %v2074_v60 = vpop.f32.mrf.mxu3  ;;  %v1089_v61 = vpop.f32.mrf.mxu0 }
 0x41e   :  { %v4247_v62 = vpack.c.bf16 %v2740_v58, %v2739_v57  ;;  %v1418_v63 = vpop.f32.mrf.mxu1  ;;  %v2354_v1 = vmax.f32 %v1745_v59, %v2074_v60 }
 0x41f   :  { %v2227_v6 = vmax.f32 %v1089_v61, %v1418_v63 }
 0x420   :  { %4343 = vst [vmem:[#allocation2 + $0x1b8] sm:$0xff] %v4247_v62   ;;  %v2482_v2 = vmax.f32 %v2226_v0, %v2354_v1 }
 0x422   :  { %v2613_v9 = vadd.f32 %v5001_v26, %v2482_v2 }
 0x424   :  { %v1747_v3 = vpop.f32.mrf.mxu2  ;;  %v2741_v12 = vmax.f32 %v2613_v9, 0.0 }
 0x425   :  { %v2076_v4 = vpop.f32.mrf.mxu3  ;;  %v1092_v5 = vpop.f32.mrf.mxu0 }
 0x426   :  { %v2355_v7 = vmax.f32 %v1747_v3, %v2076_v4  ;;  %v1421_v8 = vpop.f32.mrf.mxu1 }
 0x427   :  { %v2228_v20 = vmax.f32 %v1092_v5, %v1421_v8 }
 0x428   :  { %v2483_v10 = vmax.f32 %v2227_v6, %v2355_v7 }
 0x42a   :  { %v2614_v11 = vadd.f32 %v5001_v26, %v2483_v10 }
 0x42c   :  { %v2742_v13 = vmax.f32 %v2614_v11, 0.0  ;;  %v1750_v14 = vpop.f32.mrf.mxu2 }
 0x42d   :  { %v2079_v15 = vpop.f32.mrf.mxu3  ;;  %v1094_v16 = vpop.f32.mrf.mxu0 }
 0x42e   :  { %v4252_v17 = vpack.c.bf16 %v2742_v13, %v2741_v12  ;;  %v1423_v19 = vpop.f32.mrf.mxu1  ;;  %v2356_v21 = vmax.f32 %v1750_v14, %v2079_v15 }
 0x42f   :  { %v2229_v25 = vmax.f32 %v1094_v16, %v1423_v19 }
 0x430   :  { %4344 = vst [vmem:[#allocation2 + $0x1c0] sm:$0xff] %v4252_v17   ;;  %v2484_v22 = vmax.f32 %v2228_v20, %v2356_v21 }
 0x432   :  { %v2615_v29 = vadd.f32 %v5001_v26, %v2484_v22 }
 0x434   :  { %v1752_v50 = vpop.f32.mrf.mxu2  ;;  %v2743_v32 = vmax.f32 %v2615_v29, 0.0 }
 0x435   :  { %v2081_v23 = vpop.f32.mrf.mxu3  ;;  %v1097_v24 = vpop.f32.mrf.mxu0 }
 0x436   :  { %v2357_v27 = vmax.f32 %v1752_v50, %v2081_v23  ;;  %v1426_v28 = vpop.f32.mrf.mxu1 }
 0x437   :  { %v2230_v39 = vmax.f32 %v1097_v24, %v1426_v28 }
 0x438   :  { %v2485_v30 = vmax.f32 %v2229_v25, %v2357_v27 }
 0x43a   :  { %v2616_v31 = vadd.f32 %v5001_v26, %v2485_v30 }
 0x43c   :  { %v2744_v33 = vmax.f32 %v2616_v31, 0.0  ;;  %v1755_v34 = vpop.f32.mrf.mxu2 }
 0x43d   :  { %v2084_v35 = vpop.f32.mrf.mxu3  ;;  %v1099_v36 = vpop.f32.mrf.mxu0 }
 0x43e   :  { %v4257_v37 = vpack.c.bf16 %v2744_v33, %v2743_v32  ;;  %v1428_v38 = vpop.f32.mrf.mxu1  ;;  %v2358_v40 = vmax.f32 %v1755_v34, %v2084_v35 }
 0x43f   :  { %v2231_v45 = vmax.f32 %v1099_v36, %v1428_v38 }
 0x440   :  { %4345 = vst [vmem:[#allocation2 + $0x1c8] sm:$0xff] %v4257_v37   ;;  %v2486_v41 = vmax.f32 %v2230_v39, %v2358_v40 }
 0x442   :  { %v2617_v48 = vadd.f32 %v5001_v26, %v2486_v41 }
 0x444   :  { %v1757_v42 = vpop.f32.mrf.mxu2  ;;  %v2745_v52 = vmax.f32 %v2617_v48, 0.0 }
 0x445   :  { %v2086_v43 = vpop.f32.mrf.mxu3  ;;  %v1102_v44 = vpop.f32.mrf.mxu0 }
 0x446   :  { %v2359_v46 = vmax.f32 %v1757_v42, %v2086_v43  ;;  %v1431_v47 = vpop.f32.mrf.mxu1 }
 0x447   :  { %v2232_v58 = vmax.f32 %v1102_v44, %v1431_v47 }
 0x448   :  { %v2487_v49 = vmax.f32 %v2231_v45, %v2359_v46 }
 0x44a   :  { %v2618_v51 = vadd.f32 %v5001_v26, %v2487_v49 }
 0x44c   :  { %v2746_v53 = vmax.f32 %v2618_v51, 0.0  ;;  %v1760_v54 = vpop.f32.mrf.mxu2 }
 0x44d   :  { %v2089_v18 = vpop.f32.mrf.mxu3  ;;  %v1104_v55 = vpop.f32.mrf.mxu0 }
 0x44e   :  { %v4262_v56 = vpack.c.bf16 %v2746_v53, %v2745_v52  ;;  %v1433_v57 = vpop.f32.mrf.mxu1  ;;  %v2360_v59 = vmax.f32 %v1760_v54, %v2089_v18 }
 0x44f   :  { %v2233_v0 = vmax.f32 %v1104_v55, %v1433_v57 }
 0x450   :  { %4346 = vst [vmem:[#allocation2 + $0x1d0] sm:$0xff] %v4262_v56   ;;  %v2488_v60 = vmax.f32 %v2232_v58, %v2360_v59 }
 0x452   :  { %v2619_v3 = vadd.f32 %v5001_v26, %v2488_v60 }
 0x454   :  { %v1762_v61 = vpop.f32.mrf.mxu2  ;;  %v2747_v6 = vmax.f32 %v2619_v3, 0.0 }
 0x455   :  { %v2091_v62 = vpop.f32.mrf.mxu3  ;;  %v1107_v63 = vpop.f32.mrf.mxu0 }
 0x456   :  { %v2361_v1 = vmax.f32 %v1762_v61, %v2091_v62  ;;  %v1436_v2 = vpop.f32.mrf.mxu1 }
 0x457   :  { %v2234_v13 = vmax.f32 %v1107_v63, %v1436_v2 }
 0x458   :  { %v2489_v4 = vmax.f32 %v2233_v0, %v2361_v1 }
 0x45a   :  { %v2620_v5 = vadd.f32 %v5001_v26, %v2489_v4 }
 0x45c   :  { %v2748_v7 = vmax.f32 %v2620_v5, 0.0  ;;  %v1765_v8 = vpop.f32.mrf.mxu2 }
 0x45d   :  { %v2094_v9 = vpop.f32.mrf.mxu3  ;;  %v1109_v10 = vpop.f32.mrf.mxu0 }
 0x45e   :  { %v4267_v11 = vpack.c.bf16 %v2748_v7, %v2747_v6  ;;  %v1438_v12 = vpop.f32.mrf.mxu1  ;;  %v2362_v14 = vmax.f32 %v1765_v8, %v2094_v9 }
 0x45f   :  { %v2235_v20 = vmax.f32 %v1109_v10, %v1438_v12 }
 0x460   :  { %4347 = vst [vmem:[#allocation2 + $0x1d8] sm:$0xff] %v4267_v11   ;;  %v2490_v15 = vmax.f32 %v2234_v13, %v2362_v14 }
 0x462   :  { %v2621_v50 = vadd.f32 %v5001_v26, %v2490_v15 }
 0x464   :  { %v1767_v16 = vpop.f32.mrf.mxu2  ;;  %v2749_v25 = vmax.f32 %v2621_v50, 0.0 }
 0x465   :  { %v2096_v17 = vpop.f32.mrf.mxu3  ;;  %v1112_v19 = vpop.f32.mrf.mxu0 }
 0x466   :  { %v2363_v21 = vmax.f32 %v1767_v16, %v2096_v17  ;;  %v1441_v22 = vpop.f32.mrf.mxu1 }
 0x467   :  { %v2236_v33 = vmax.f32 %v1112_v19, %v1441_v22 }
 0x468   :  { %v2491_v23 = vmax.f32 %v2235_v20, %v2363_v21  ;;  %v4381_v21 = vmov 0.0  }
 0x46a   :  { %v2622_v24 = vadd.f32 %v5001_v26, %v2491_v23 }
 0x46c   :  { %v2750_v27 = vmax.f32 %v2622_v24, 0.0  ;;  %v1770_v28 = vpop.f32.mrf.mxu2 }
 0x46d   :  { %v2099_v29 = vpop.f32.mrf.mxu3  ;;  %v1114_v30 = vpop.f32.mrf.mxu0 }
 0x46e   :  { %v4272_v31 = vpack.c.bf16 %v2750_v27, %v2749_v25  ;;  %v1443_v32 = vpop.f32.mrf.mxu1  ;;  %v2364_v34 = vmax.f32 %v1770_v28, %v2099_v29 }
 0x46f   :  { %v2237_v39 = vmax.f32 %v1114_v30, %v1443_v32 }
 0x470   :  { %4348 = vst [vmem:[#allocation2 + $0x1e0] sm:$0xff] %v4272_v31   ;;  %v2492_v35 = vmax.f32 %v2236_v33, %v2364_v34 }
 0x472   :  { %v2623_v42 = vadd.f32 %v5001_v26, %v2492_v35 }
 0x474   :  { %v1772_v36 = vpop.f32.mrf.mxu2  ;;  %v2751_v45 = vmax.f32 %v2623_v42, 0.0 }
 0x475   :  { %v2101_v37 = vpop.f32.mrf.mxu3  ;;  %v1117_v38 = vpop.f32.mrf.mxu0 }
 0x476   :  { %v2365_v40 = vmax.f32 %v1772_v36, %v2101_v37  ;;  %v1446_v41 = vpop.f32.mrf.mxu1 }
 0x477   :  { %v2238_v53 = vmax.f32 %v1117_v38, %v1446_v41 }
 0x478   :  { %v2493_v43 = vmax.f32 %v2237_v39, %v2365_v40 }
 0x47a   :  { %v2624_v44 = vadd.f32 %v5001_v26, %v2493_v43 }
 0x47c   :  { %v2752_v46 = vmax.f32 %v2624_v44, 0.0  ;;  %v1775_v47 = vpop.f32.mrf.mxu2 }
 0x47d   :  { %v2104_v48 = vpop.f32.mrf.mxu3  ;;  %v1119_v51 = vpop.f32.mrf.mxu0 }
 0x47e   :  { %v4277_v49 = vpack.c.bf16 %v2752_v46, %v2751_v45  ;;  %v1448_v52 = vpop.f32.mrf.mxu1  ;;  %v2366_v54 = vmax.f32 %v1775_v47, %v2104_v48 }
 0x47f   :  { %v2239_v57 = vmax.f32 %v1119_v51, %v1448_v52 }
 0x480   :  { %4349 = vst [vmem:[#allocation2 + $0x1e8] sm:$0xff] %v4277_v49   ;;  %v2494_v18 = vmax.f32 %v2238_v53, %v2366_v54 }
 0x482   :  { %v2625_v59 = vadd.f32 %v5001_v26, %v2494_v18 }
 0x484   :  { %v1777_v55 = vpop.f32.mrf.mxu2  ;;  %v2753_v0 = vmax.f32 %v2625_v59, 0.0 }
 0x485   :  { %v2106_v56 = vpop.f32.mrf.mxu3  ;;  %v1122_v61 = vpop.f32.mrf.mxu0 }
 0x486   :  { %v2367_v58 = vmax.f32 %v1777_v55, %v2106_v56  ;;  %v1451_v62 = vpop.f32.mrf.mxu1 }
 0x487   :  { %v2240_v5 = vmax.f32 %v1122_v61, %v1451_v62 }
 0x488   :  { %v2495_v60 = vmax.f32 %v2239_v57, %v2367_v58 }
 0x48a   :  { %v2626_v63 = vadd.f32 %v5001_v26, %v2495_v60 }
 0x48c   :  { %v2754_v1 = vmax.f32 %v2626_v63, 0.0  ;;  %v1780_v2 = vpop.f32.mrf.mxu2 }
 0x48d   :  { %v2109_v3 = vpop.f32.mrf.mxu3  ;;  %v1124_v7 = vpop.f32.mrf.mxu0 }
 0x48e   :  { %v4282_v4 = vpack.c.bf16 %v2754_v1, %v2753_v0  ;;  %v2368_v6 = vmax.f32 %v1780_v2, %v2109_v3  ;;  %v1453_v8 = vpop.f32.mrf.mxu1 }
 0x48f   :  { %v2241_v12 = vmax.f32 %v1124_v7, %v1453_v8 }
 0x490   :  { %4350 = vst [vmem:[#allocation2 + $0x1f0] sm:$0xff] %v4282_v4   ;;  %v2496_v9 = vmax.f32 %v2240_v5, %v2368_v6 }
 0x492   :  { %v2627_v14 = vadd.f32 %v5001_v26, %v2496_v9 }
 0x494   :  { %v1782_v10 = vpop.f32.mrf.mxu2  ;;  %v2755_v17 = vmax.f32 %v2627_v14, 0.0 }
 0x495   :  { %v2111_v11 = vpop.f32.mrf.mxu3 }
 0x496   :  { %v2369_v13 = vmax.f32 %v1782_v10, %v2111_v11 }
 0x498   :  { %v2497_v15 = vmax.f32 %v2241_v12, %v2369_v13 }
 0x49a   :  { %v2628_v16 = vadd.f32 %v5001_v26, %v2497_v15 }
 0x49c   :  { %v2756_v19 = vmax.f32 %v2628_v16, 0.0 }
 0x49e   :  { %v4287_v20 = vpack.c.bf16 %v2756_v19, %v2755_v17 }
 0x4a0   :  { %4351 = vst [vmem:[#allocation2 + $0x1f8] sm:$0xff] %v4287_v20  }
 0x4a1 LB: > { %s3952_s23 = sshll.u32 %s4387_s0, 6  ;;  %s3801_s27 = sshll.u32 %s4387_s0, 2  ;;  %s4387_s0 = sphi %s5144_s0, %s3018_s0   ;;  %v4383_v21 = vphi %v4381_v21, %v4382_v21  }
 0x4a2   : > { %s3025_s26 = scalar_lea.vmem %s5191_s3, %s3952_s23  ;;  %s3021_s28 = scalar_lea.vmem [#allocation2], %s3801_s27 }
 0x4a3   : > { %v3960_v26 = vld [vmem:[%s3025_s26 + $0x38] sm:$0xff]  ;;  %v3959_v22 = vld [vmem:[%s3025_s26 + $0x30] sm:$0xff]  ;;  %v3958_v50 = vld [vmem:[%s3025_s26 + $0x28] sm:$0xff]  ;;  %s3018_s0 = sadd.s32 1, %s4387_s0  }
 0x4a4   : > { %3090 = vmatpush.bf16.msra.mxu0 %v3960_v26  ;;  %v3957_v23 = vld [vmem:[%s3025_s26 + $0x20] sm:$0xff]  ;;  %v3956_v24 = vld [vmem:[%s3025_s26 + $0x18] sm:$0xff]  ;;  %v3955_v25 = vld [vmem:[%s3025_s26 + $0x10] sm:$0xff]  ;;  %p3015_p0 = scmp.ge.s32.totalorder %s3018_s0, 121  }
 0x4a5   : > { %v3954_v27 = vld [vmem:[%s3025_s26 + $0x8] sm:$0xff]  ;;  %v3953_v28 = vld [vmem:[%s3025_s26] sm:$0xff]  ;;  %v3968_v33 = vld [vmem:[%s5193_s5 + $0x38] sm:$0xff] (%p3015_p0) }
 0x4a6   :  { %v3967_v34 = vld [vmem:[%s5193_s5 + $0x30] sm:$0xff] (%p3015_p0)  ;;  %v3966_v35 = vld [vmem:[%s5193_s5 + $0x28] sm:$0xff] (%p3015_p0)  ;;  %v3965_v36 = vld [vmem:[%s5193_s5 + $0x20] sm:$0xff] (%p3015_p0) }
 0x4a7   : > { %v3022_v29 = vld [vmem:[%s3021_s28] sm:$0xf]  ;;  %v3964_v37 = vld [vmem:[%s5193_s5 + $0x18] sm:$0xff] (%p3015_p0)  ;;  %v3963_v39 = vld [vmem:[%s5193_s5 + $0x10] sm:$0xff] (%p3015_p0) }
 0x4a8   : > { %3091 = vmatpush.bf16.msra.mxu0 %v3959_v22  ;;  %v4371_v38 = vld [vmem:[%s5192_s4] ss:$0 sm:$0xff] (%p3015_p0)  ;;  %v3962_v41 = vld [vmem:[%s5193_s5 + $0x8] sm:$0xff] (%p3015_p0) }
 0x4a9   :  { %v3961_v43 = vld [vmem:[%s5193_s5] sm:$0xff] (%p3015_p0) }
 0x4aa   :  { %v4372_v45 = vld [vmem:[%s5194_s6] ss:$0 sm:$0xff] (%p3015_p0) }
 0x4ac   : > { %3092 = vmatpush.bf16.msra.mxu0 %v3958_v50 }
 0x4b0   : > { %3093 = vmatpush.bf16.msra.mxu0 %v3957_v23 }
 0x4b4   : > { %3094 = vmatpush.bf16.msra.mxu0 %v3956_v24 }
 0x4b8   : > { %3095 = vmatpush.bf16.msra.mxu0 %v3955_v25 }
 0x4bc   : > { %3096 = vmatpush.bf16.msra.mxu0 %v3954_v27 }
 0x4c0   : > { %3097 = vmatpush.bf16.msra.mxu0 %v3953_v28 }
 0x4c3   : > { %3098 = vmatmul.bf16.vlgmr.msra.gmra.mxu0 %v3022_v29 }
 0x4c4   :  { %3179 = vmatpush.bf16.msra.mxu0 (%p3015_p0), %v3968_v33 }
 0x4c8   :  { %3180 = vmatpush.bf16.msra.mxu0 (%p3015_p0), %v3967_v34 }
 0x4cc   :  { %3181 = vmatpush.bf16.msra.mxu0 (%p3015_p0), %v3966_v35 }
 0x4d0   :  { %3182 = vmatpush.bf16.msra.mxu0 (%p3015_p0), %v3965_v36 }
 0x4d4   :  { %3183 = vmatpush.bf16.msra.mxu0 (%p3015_p0), %v3964_v37 }
 0x4d8   :  { %3184 = vmatpush.bf16.msra.mxu0 (%p3015_p0), %v3963_v39 }
 0x4dc   :  { %3185 = vmatpush.bf16.msra.mxu0 (%p3015_p0), %v3962_v41 }
 0x4e0   :  { %3186 = vmatpush.bf16.msra.mxu0 (%p3015_p0), %v3961_v43 }
 0x540   : > { %v3099_v30 = vpop.f32.mrf.mxu0 }
 0x541   : > { %v3103_v31 = vadd.f32 %v4383_v21, %v3099_v30  }
 0x543   : > { %v4382_v21 = vmov %v3103_v31   ;;  %v3108_v40 = vadd.f32 (%p3015_p0), %v4371_v38, %v3103_v31 }
 0x544   :  { %3017 = sbr.rel (!%p3015_p0) target bundleno = 1185 (0x4a1), region = 57 }
 0x545   :  { %v3109_v42 = vmax.f32 (%p3015_p0), %v3108_v40, 0.0 }
 0x547   :  { %v3110_v44 = vpack.c.bf16 (%p3015_p0), %v3109_v42, %v3109_v42 }
 0x548   : > { %v3101_v32 = vpop.f32.mrf.mxu0 }
 0x549   :  { %3187 = vmatmul.bf16.vlgmr.msra.gmra.mxu0 %v3110_v44 }
 0x5c6   :  { %v3188_v46 = vpop.f32.mrf.mxu0 }
 0x5c7   :  { %v3189_v47 = vadd.f32 %v4372_v45, %v3188_v46 }
 0x5c9   :  { %3192 = vst [vmem:[%s5195_s7] sm:$0xff] %v3189_v47 }
 0x5ce   :  { %v3190_v48 = vpop.f32.mrf.mxu0 }

</bundles_post_ra>
